<compile_context>
chip_gen: v7x
topology: tpu7x:2x2x1
jax: 0.10.0
libtpu: 0.0.40
codegen_flags: <defaults>
</compile_context>

<pallas_src>
import functools
import math

import jax
import jax.numpy as jnp
from jax.experimental import pallas as pl
from jax.experimental.pallas import tpu as pltpu

_LN_EPS = 1e-5  # match PyTorch nn.LayerNorm default
_PARALLEL_1D = pltpu.CompilerParams(dimension_semantics=("parallel",))


def _row_block(n, max_block=256):
    """Pick a row-tile size that divides n (keeps VMEM bounded)."""
    if n <= max_block:
        return n
    for cand in (max_block, 128, 64, 32, 16, 8):
        if n % cand == 0:
            return cand
    return n


# ----------------------------- in-kernel helpers -----------------------------

def _layernorm(x, g, b, eps):
    mu = jnp.mean(x, axis=-1, keepdims=True)
    var = jnp.mean(jnp.square(x - mu), axis=-1, keepdims=True)
    return (x - mu) * jax.lax.rsqrt(var + eps) * g + b


def _mha_heads(q, k, v, bias, num_heads, scale, d_model):
    """All-head attention on lane-dense [T, D] slabs; returns [T, D]."""
    dh = d_model // num_heads
    heads = []
    for hh in range(num_heads):
        lo = hh * dh
        qh = q[:, lo:lo + dh].astype(jnp.bfloat16)
        kh = k[:, lo:lo + dh].astype(jnp.bfloat16)
        vh = v[:, lo:lo + dh].astype(jnp.bfloat16)
        sc = jax.lax.dot_general(qh, kh, (((1,), (1,)), ((), ())),
                                 preferred_element_type=jnp.float32) * scale
        if bias is not None:
            sc = sc + bias
        sc = sc - jnp.max(sc, axis=-1, keepdims=True)
        p = jnp.exp(sc)
        p = p * pl.reciprocal(jnp.sum(p, axis=-1, keepdims=True), approx=True)
        heads.append(jnp.dot(p.astype(jnp.bfloat16), vh,
                             preferred_element_type=jnp.float32))
    return jnp.concatenate(heads, axis=-1)      # [T, D] lane-dense


# ----------------------------- Pallas kernels --------------------------------

def _layernorm_kernel(x_ref, g_ref, b_ref, o_ref, *, eps):
    o_ref[...] = _layernorm(x_ref[...], g_ref[...], b_ref[...], eps)


def _ln_ffn_res_kernel(x_ref, g_ref, b_ref, w1_ref, b1_ref, w2_ref, b2_ref,
                       o_ref, *, eps):
    # fused LayerNorm -> Linear -> ReLU -> Linear -> +residual
    x = x_ref[...]
    y = _layernorm(x, g_ref[...], b_ref[...], eps)
    hid = jnp.dot(y.astype(jnp.bfloat16), w1_ref[...].astype(jnp.bfloat16),
                  preferred_element_type=jnp.float32) + b1_ref[...]
    hid = jnp.maximum(hid, 0.0)
    out = jnp.dot(hid.astype(jnp.bfloat16), w2_ref[...].astype(jnp.bfloat16),
                  preferred_element_type=jnp.float32) + b2_ref[...]
    o_ref[...] = x + out


def _self_attn_layer_kernel(*refs, num_heads, scale, causal, has_mask,
                            d_model, eps):
    # fused: LN1 -> QKV proj -> multi-head causal attention -> out proj -> +residual
    if has_mask:
        (x_ref, g_ref, b_ref, wqkv_ref, bqkv_ref, mask_ref,
         wo_ref, bo_ref, o_ref) = refs
    else:
        (x_ref, g_ref, b_ref, wqkv_ref, bqkv_ref,
         wo_ref, bo_ref, o_ref) = refs
        mask_ref = None

    x = x_ref[0]                                            # [T, D]
    y = _layernorm(x, g_ref[...], b_ref[...], eps)
    qkv = jnp.dot(y.astype(jnp.bfloat16), wqkv_ref[...].astype(jnp.bfloat16),
                  preferred_element_type=jnp.float32) + bqkv_ref[...]   # [T, 3D]
    q = qkv[:, :d_model]
    k = qkv[:, d_model:2 * d_model]
    v = qkv[:, 2 * d_model:]

    t = x.shape[0]
    bias = None
    if causal:
        row = jax.lax.broadcasted_iota(jnp.int32, (t, t), 0)
        col = jax.lax.broadcasted_iota(jnp.int32, (t, t), 1)
        bias = jnp.where(col <= row, 0.0, -1e9).astype(jnp.float32)
    if mask_ref is not None:
        m = mask_ref[...]
        bias = m if bias is None else bias + m

    attn = _mha_heads(q, k, v, bias, num_heads, scale, d_model)   # [T, D]
    proj = jnp.dot(attn.astype(jnp.bfloat16), wo_ref[...].astype(jnp.bfloat16),
                   preferred_element_type=jnp.float32) + bo_ref[...]
    o_ref[0] = x + proj


def _cross_attn_layer_kernel(*refs, num_heads, scale, has_mask, d_model, eps):
    # fused: LN2 -> Q proj, K|V proj of h -> multi-head attention -> out proj -> +residual
    if has_mask:
        (x_ref, g_ref, b_ref, wq_ref, bq_ref, h_ref, wkv_ref, bkv_ref,
         mask_ref, wo_ref, bo_ref, o_ref) = refs
    else:
        (x_ref, g_ref, b_ref, wq_ref, bq_ref, h_ref, wkv_ref, bkv_ref,
         wo_ref, bo_ref, o_ref) = refs
        mask_ref = None

    x = x_ref[0]                                            # [T, D]
    y = _layernorm(x, g_ref[...], b_ref[...], eps)
    q = jnp.dot(y.astype(jnp.bfloat16), wq_ref[...].astype(jnp.bfloat16),
                preferred_element_type=jnp.float32) + bq_ref[...]       # [T, D]

    hm = h_ref[0]                                           # [S, D]
    kv = jnp.dot(hm.astype(jnp.bfloat16), wkv_ref[...].astype(jnp.bfloat16),
                 preferred_element_type=jnp.float32) + bkv_ref[...]     # [S, 2D]
    k = kv[:, :d_model]
    v = kv[:, d_model:]

    bias = mask_ref[...] if mask_ref is not None else None
    attn = _mha_heads(q, k, v, bias, num_heads, scale, d_model)   # [T, D]
    proj = jnp.dot(attn.astype(jnp.bfloat16), wo_ref[...].astype(jnp.bfloat16),
                   preferred_element_type=jnp.float32) + bo_ref[...]
    o_ref[0] = x + proj


# ------------------------------ thin wrappers ---------------------------------

def pallas_layernorm(x, gamma, beta, eps=_LN_EPS):
    shape = x.shape
    d = shape[-1]
    x2 = x.reshape(-1, d)
    n = x2.shape[0]
    bn = _row_block(n)
    out = pl.pallas_call(
        functools.partial(_layernorm_kernel, eps=eps),
        out_shape=jax.ShapeDtypeStruct((n, d), jnp.float32),
        grid=(n // bn,),
        in_specs=[pl.BlockSpec((bn, d), lambda i: (i, 0)),
                  pl.BlockSpec((1, d), lambda i: (0, 0)),
                  pl.BlockSpec((1, d), lambda i: (0, 0))],
        out_specs=pl.BlockSpec((bn, d), lambda i: (i, 0)),
        compiler_params=_PARALLEL_1D,
    )(x2, gamma.reshape(1, d), beta.reshape(1, d))
    return out.reshape(shape)


def pallas_ln_ffn_res(x, gamma, beta, w1, b1, w2, b2, eps=_LN_EPS):
    B, T, D = x.shape
    ffd = w1.shape[1]
    x2 = x.reshape(B * T, D)
    n = B * T
    bn = _row_block(n)
    out = pl.pallas_call(
        functools.partial(_ln_ffn_res_kernel, eps=eps),
        out_shape=jax.ShapeDtypeStruct((n, D), jnp.float32),
        grid=(n // bn,),
        in_specs=[pl.BlockSpec((bn, D), lambda i: (i, 0)),
                  pl.BlockSpec((1, D), lambda i: (0, 0)),
                  pl.BlockSpec((1, D), lambda i: (0, 0)),
                  pl.BlockSpec((D, ffd), lambda i: (0, 0)),
                  pl.BlockSpec((1, ffd), lambda i: (0, 0)),
                  pl.BlockSpec((ffd, D), lambda i: (0, 0)),
                  pl.BlockSpec((1, D), lambda i: (0, 0))],
        out_specs=pl.BlockSpec((bn, D), lambda i: (i, 0)),
        compiler_params=_PARALLEL_1D,
    )(x2, gamma.reshape(1, D), beta.reshape(1, D),
      w1, b1.reshape(1, ffd), w2, b2.reshape(1, D))
    return out.reshape(B, T, D)


def pallas_self_attn_layer(x, gamma, beta, w_qkv, b_qkv, wo, bo, *,
                           num_heads, mask=None, causal=True, eps=_LN_EPS):
    B, T, D = x.shape
    dh = D // num_heads
    scale = 1.0 / math.sqrt(dh)
    has_mask = mask is not None

    args = [x, gamma.reshape(1, D), beta.reshape(1, D),
            w_qkv, b_qkv.reshape(1, 3 * D)]
    in_specs = [pl.BlockSpec((1, T, D), lambda i: (i, 0, 0)),
                pl.BlockSpec((1, D), lambda i: (0, 0)),
                pl.BlockSpec((1, D), lambda i: (0, 0)),
                pl.BlockSpec((D, 3 * D), lambda i: (0, 0)),
                pl.BlockSpec((1, 3 * D), lambda i: (0, 0))]
    if has_mask:
        args.append(mask.astype(jnp.float32))           # additive [T, T]
        in_specs.append(pl.BlockSpec((T, T), lambda i: (0, 0)))
    args += [wo, bo.reshape(1, D)]
    in_specs += [pl.BlockSpec((D, D), lambda i: (0, 0)),
                 pl.BlockSpec((1, D), lambda i: (0, 0))]

    kernel = functools.partial(_self_attn_layer_kernel, num_heads=num_heads,
                               scale=scale, causal=causal, has_mask=has_mask,
                               d_model=D, eps=eps)
    return pl.pallas_call(
        kernel,
        out_shape=jax.ShapeDtypeStruct((B, T, D), jnp.float32),
        grid=(B,),
        in_specs=in_specs,
        out_specs=pl.BlockSpec((1, T, D), lambda i: (i, 0, 0)),
        compiler_params=_PARALLEL_1D,
    )(*args)


def pallas_cross_attn_layer(x, h, gamma, beta, wq, bq, w_kv, b_kv, wo, bo, *,
                            num_heads, mask=None, eps=_LN_EPS):
    B, T, D = x.shape
    S = h.shape[1]
    dh = D // num_heads
    scale = 1.0 / math.sqrt(dh)
    has_mask = mask is not None

    args = [x, gamma.reshape(1, D), beta.reshape(1, D),
            wq, bq.reshape(1, D), h, w_kv, b_kv.reshape(1, 2 * D)]
    in_specs = [pl.BlockSpec((1, T, D), lambda i: (i, 0, 0)),
                pl.BlockSpec((1, D), lambda i: (0, 0)),
                pl.BlockSpec((1, D), lambda i: (0, 0)),
                pl.BlockSpec((D, D), lambda i: (0, 0)),
                pl.BlockSpec((1, D), lambda i: (0, 0)),
                pl.BlockSpec((1, S, D), lambda i: (i, 0, 0)),
                pl.BlockSpec((D, 2 * D), lambda i: (0, 0)),
                pl.BlockSpec((1, 2 * D), lambda i: (0, 0))]
    if has_mask:
        args.append(mask.astype(jnp.float32))            # additive [T, S]
        in_specs.append(pl.BlockSpec((T, S), lambda i: (0, 0)))
    args += [wo, bo.reshape(1, D)]
    in_specs += [pl.BlockSpec((D, D), lambda i: (0, 0)),
                 pl.BlockSpec((1, D), lambda i: (0, 0))]

    kernel = functools.partial(_cross_attn_layer_kernel, num_heads=num_heads,
                               scale=scale, has_mask=has_mask, d_model=D,
                               eps=eps)
    return pl.pallas_call(
        kernel,
        out_shape=jax.ShapeDtypeStruct((B, T, D), jnp.float32),
        grid=(B,),
        in_specs=in_specs,
        out_specs=pl.BlockSpec((1, T, D), lambda i: (i, 0, 0)),
        compiler_params=_PARALLEL_1D,
    )(*args)


# ---------------------------- model forward ----------------------------------

def causal_decoder_forward(params, output, h, self_mask=None, cross_mask=None,
                           z=None, fl=None, proj=False, mode="n", *, num_heads):
    # LDM (linguistic deconfounding module): with mode='n', z=None, fl=None,
    # proj=False it is a pass-through.
    # TODO(synk): LDM causal-intervention branch (z / fl / proj) is not defined
    # in the provided snippet, so it is not implemented here.
    x = output
    ht = x  # corresponds to self.ht = output

    # If no self_mask is given, the self-attention applies a standard causal
    # (subsequent) mask generated inside the kernel. An explicit self_mask is
    # treated as an additive [T, T] mask.
    causal_self = self_mask is None

    for lp in params["layers"]:
        # --- self-attention block (LN1 + QKV + attn + out-proj + residual), 1 kernel
        x = pallas_self_attn_layer(x, lp["ln1_g"], lp["ln1_b"],
                                   lp["self_w_qkv"], lp["self_b_qkv"],
                                   lp["self_wo"], lp["self_bo"],
                                   num_heads=num_heads, mask=self_mask,
                                   causal=causal_self)
        # --- cross-attention block (LN2 + Q + K|V of h + attn + out-proj + residual), 1 kernel
        x = pallas_cross_attn_layer(x, h, lp["ln2_g"], lp["ln2_b"],
                                    lp["cross_wq"], lp["cross_bq"],
                                    lp["cross_w_kv"], lp["cross_b_kv"],
                                    lp["cross_wo"], lp["cross_bo"],
                                    num_heads=num_heads, mask=cross_mask)
        # --- feed-forward block (LN3 + Linear -> ReLU -> Linear + residual), 1 kernel
        x = pallas_ln_ffn_res(x, lp["ln3_g"], lp["ln3_b"],
                              lp["ffn_w1"], lp["ffn_b1"],
                              lp["ffn_w2"], lp["ffn_b2"])

    x = pallas_layernorm(x, params["norm_g"], params["norm_b"])
    return x, ht


# ------------------------------ parameter init --------------------------------

def _xavier_uniform(key, fan_in, fan_out):
    bound = math.sqrt(6.0 / (fan_in + fan_out))
    return jax.random.uniform(key, (fan_in, fan_out), jnp.float32, -bound, bound)


def init_causal_decoder_params(key, embed_dim, num_layer, num_heads, ff_dim):
    D = embed_dim

    def self_attn_params(k):
        ks = jax.random.split(k, 4)
        wq, wk, wv, wo = (_xavier_uniform(kk, D, D) for kk in ks)
        return {
            "self_w_qkv": jnp.concatenate([wq, wk, wv], axis=1),   # [D, 3D]
            "self_b_qkv": jnp.zeros((3 * D,), jnp.float32),
            "self_wo": wo,
            "self_bo": jnp.zeros((D,), jnp.float32),
        }

    def cross_attn_params(k):
        ks = jax.random.split(k, 4)
        wq, wk, wv, wo = (_xavier_uniform(kk, D, D) for kk in ks)
        return {
            "cross_wq": wq,
            "cross_bq": jnp.zeros((D,), jnp.float32),
            "cross_w_kv": jnp.concatenate([wk, wv], axis=1),       # [D, 2D]
            "cross_b_kv": jnp.zeros((2 * D,), jnp.float32),
            "cross_wo": wo,
            "cross_bo": jnp.zeros((D,), jnp.float32),
        }

    layers = []
    for _ in range(num_layer):
        key, k_self, k_cross, k_ff1, k_ff2 = jax.random.split(key, 5)
        lp = {}
        lp.update(self_attn_params(k_self))
        lp.update(cross_attn_params(k_cross))
        lp.update({
            "ffn_w1": _xavier_uniform(k_ff1, D, ff_dim),
            "ffn_b1": jnp.zeros((ff_dim,), jnp.float32),
            "ffn_w2": _xavier_uniform(k_ff2, ff_dim, D),
            "ffn_b2": jnp.zeros((D,), jnp.float32),
            "ln1_g": jnp.ones((D,), jnp.float32),
            "ln1_b": jnp.zeros((D,), jnp.float32),
            "ln2_g": jnp.ones((D,), jnp.float32),
            "ln2_b": jnp.zeros((D,), jnp.float32),
            "ln3_g": jnp.ones((D,), jnp.float32),
            "ln3_b": jnp.zeros((D,), jnp.float32),
        })
        layers.append(lp)

    return {
        "layers": layers,
        "norm_g": jnp.ones((D,), jnp.float32),
        "norm_b": jnp.zeros((D,), jnp.float32),
    }


_MATMUL_WEIGHTS = ("self_w_qkv", "self_wo", "cross_wq", "cross_w_kv",
                   "cross_wo", "ffn_w1", "ffn_w2")


def cast_matmul_weights_bf16(params):
    """Store the large matmul weights as bf16 once (halves weight DMA traffic);
    kernels cast operands to bf16 anyway, so math is unchanged."""
    out = {k: v for k, v in params.items() if k != "layers"}
    out["layers"] = []
    for lp in params["layers"]:
        new_lp = dict(lp)
        for name in _MATMUL_WEIGHTS:
            new_lp[name] = lp[name].astype(jnp.bfloat16)
        out["layers"].append(new_lp)
    return out


# ------------------------------------ main ------------------------------------

if __name__ == "__main__":
    embed_dim, num_layer, num_heads, ff_dim = 32, 2, 4, 64
    B, T, S = 2, 8, 16

    root = jax.random.PRNGKey(0)
    k_params, k_out, k_h = jax.random.split(root, 3)

    params = init_causal_decoder_params(k_params, embed_dim, num_layer,
                                        num_heads, ff_dim)
    params = cast_matmul_weights_bf16(params)

    output = jax.random.normal(k_out, (B, T, embed_dim), jnp.float32)  # decoder tokens
    h = jax.random.normal(k_h, (B, S, embed_dim), jnp.float32)         # encoder memory

    # self_mask=None -> causal (subsequent) mask is generated inside the
    # self-attention kernel; cross_mask=None -> no cross mask at all.
    fwd = jax.jit(functools.partial(causal_decoder_forward,
                                    num_heads=num_heads))
    out, ht = fwd(params, output, h)
    out = jax.block_until_ready(out)
    ht = jax.block_until_ready(ht)

    assert out.shape == (B, T, embed_dim)
    assert ht.shape == (B, T, embed_dim)
    assert bool(jnp.all(jnp.isfinite(out)))
    print("KERNEL_OK")
</pallas_src>

<mosaic_0001>
module attributes {stable_mosaic.version = 11 : i64} {
  func.func @_ln_ffn_res_kernel(%arg0: i32, %arg1: memref<16x32xf32, #tpu.memory_space<vmem>>, %arg2: memref<1x32xf32, #tpu.memory_space<vmem>>, %arg3: memref<1x32xf32, #tpu.memory_space<vmem>>, %arg4: memref<32x64xbf16, #tpu.memory_space<vmem>>, %arg5: memref<1x64xf32, #tpu.memory_space<vmem>>, %arg6: memref<64x32xbf16, #tpu.memory_space<vmem>>, %arg7: memref<1x32xf32, #tpu.memory_space<vmem>>, %arg8: memref<16x32xf32, #tpu.memory_space<vmem>>) attributes {dimension_semantics = [#tpu.dimension_semantics<parallel>], iteration_bounds = array<i64: 1>, scalar_prefetch = 0 : i64, scratch_operands = 0 : i64, tpu.core_type = #tpu.core_type<tc>, window_params = [{transform_indices = @transform_0, window_bounds = array<i64: 16, 32>}, {pipeline_mode = #tpu.pipeline_mode<synchronous>, transform_indices = @transform_1, window_bounds = array<i64: 1, 32>}, {pipeline_mode = #tpu.pipeline_mode<synchronous>, transform_indices = @transform_2, window_bounds = array<i64: 1, 32>}, {pipeline_mode = #tpu.pipeline_mode<synchronous>, transform_indices = @transform_3, window_bounds = array<i64: 32, 64>}, {pipeline_mode = #tpu.pipeline_mode<synchronous>, transform_indices = @transform_4, window_bounds = array<i64: 1, 64>}, {pipeline_mode = #tpu.pipeline_mode<synchronous>, transform_indices = @transform_5, window_bounds = array<i64: 64, 32>}, {pipeline_mode = #tpu.pipeline_mode<synchronous>, transform_indices = @transform_6, window_bounds = array<i64: 1, 32>}, {transform_indices = @transform_7, window_bounds = array<i64: 16, 32>}]} {
    %c0 = arith.constant 0 : index
    %c0_0 = arith.constant 0 : index
    %0 = vector.load %arg1[%c0, %c0_0] : memref<16x32xf32, #tpu.memory_space<vmem>>, vector<16x32xf32>
    %c0_1 = arith.constant 0 : index
    %c0_2 = arith.constant 0 : index
    %1 = vector.load %arg2[%c0_1, %c0_2] : memref<1x32xf32, #tpu.memory_space<vmem>>, vector<1x32xf32>
    %c0_3 = arith.constant 0 : index
    %c0_4 = arith.constant 0 : index
    %2 = vector.load %arg3[%c0_3, %c0_4] : memref<1x32xf32, #tpu.memory_space<vmem>>, vector<1x32xf32>
    %cst = arith.constant dense<0.000000e+00> : vector<16xf32>
    %3 = vector.multi_reduction <add>, %0, %cst [1] : vector<16x32xf32> to vector<16xf32>
    %4 = vector.shape_cast %3 : vector<16xf32> to vector<16x1xf32>
    %cst_5 = arith.constant 3.200000e+01 : f32
    %5 = vector.broadcast %cst_5 : f32 to vector<16x1xf32>
    %6 = arith.divf %4, %5 : vector<16x1xf32>
    %7 = vector.broadcast %6 : vector<16x1xf32> to vector<16x32xf32>
    %8 = arith.subf %0, %7 : vector<16x32xf32>
    %9 = arith.mulf %8, %8 : vector<16x32xf32>
    %cst_6 = arith.constant dense<0.000000e+00> : vector<16xf32>
    %10 = vector.multi_reduction <add>, %9, %cst_6 [1] : vector<16x32xf32> to vector<16xf32>
    %11 = vector.shape_cast %10 : vector<16xf32> to vector<16x1xf32>
    %cst_7 = arith.constant 3.200000e+01 : f32
    %12 = vector.broadcast %cst_7 : f32 to vector<16x1xf32>
    %13 = arith.divf %11, %12 : vector<16x1xf32>
    %14 = vector.broadcast %6 : vector<16x1xf32> to vector<16x32xf32>
    %15 = arith.subf %0, %14 : vector<16x32xf32>
    %cst_8 = arith.constant 9.99999974E-6 : f32
    %16 = vector.broadcast %cst_8 : f32 to vector<16x1xf32>
    %17 = arith.addf %13, %16 : vector<16x1xf32>
    %18 = math.rsqrt %17 : vector<16x1xf32>
    %19 = vector.broadcast %18 : vector<16x1xf32> to vector<16x32xf32>
    %20 = arith.mulf %15, %19 : vector<16x32xf32>
    %21 = vector.broadcast %1 : vector<1x32xf32> to vector<16x32xf32>
    %22 = arith.mulf %20, %21 : vector<16x32xf32>
    %23 = vector.broadcast %2 : vector<1x32xf32> to vector<16x32xf32>
    %24 = arith.addf %22, %23 : vector<16x32xf32>
    %25 = arith.truncf %24 : vector<16x32xf32> to vector<16x32xbf16>
    %c0_9 = arith.constant 0 : index
    %c0_10 = arith.constant 0 : index
    %26 = vector.load %arg4[%c0_9, %c0_10] : memref<32x64xbf16, #tpu.memory_space<vmem>>, vector<32x64xbf16>
    %cst_11 = arith.constant dense<0.000000e+00> : vector<16x64xf32>
    %27 = tpu.matmul %25, %26, %cst_11 {dimension_numbers = #tpu.dot_dimension_numbers<[1], [0], [0], [1], [0, 0, 1, 1], [], []>} : vector<16x32xbf16>, vector<32x64xbf16>, vector<16x64xf32> -> vector<16x64xf32>
    %c0_12 = arith.constant 0 : index
    %c0_13 = arith.constant 0 : index
    %28 = vector.load %arg5[%c0_12, %c0_13] : memref<1x64xf32, #tpu.memory_space<vmem>>, vector<1x64xf32>
    %29 = vector.broadcast %28 : vector<1x64xf32> to vector<16x64xf32>
    %30 = arith.addf %27, %29 : vector<16x64xf32>
    %cst_14 = arith.constant 0.000000e+00 : f32
    %31 = vector.broadcast %cst_14 : f32 to vector<16x64xf32>
    %32 = arith.maximumf %30, %31 : vector<16x64xf32>
    %33 = arith.truncf %32 : vector<16x64xf32> to vector<16x64xbf16>
    %c0_15 = arith.constant 0 : index
    %c0_16 = arith.constant 0 : index
    %34 = vector.load %arg6[%c0_15, %c0_16] : memref<64x32xbf16, #tpu.memory_space<vmem>>, vector<64x32xbf16>
    %cst_17 = arith.constant dense<0.000000e+00> : vector<16x32xf32>
    %35 = tpu.matmul %33, %34, %cst_17 {dimension_numbers = #tpu.dot_dimension_numbers<[1], [0], [0], [1], [0, 0, 1, 1], [], []>} : vector<16x64xbf16>, vector<64x32xbf16>, vector<16x32xf32> -> vector<16x32xf32>
    %c0_18 = arith.constant 0 : index
    %c0_19 = arith.constant 0 : index
    %36 = vector.load %arg7[%c0_18, %c0_19] : memref<1x32xf32, #tpu.memory_space<vmem>>, vector<1x32xf32>
    %37 = vector.broadcast %36 : vector<1x32xf32> to vector<16x32xf32>
    %38 = arith.addf %35, %37 : vector<16x32xf32>
    %39 = arith.addf %0, %38 : vector<16x32xf32>
    %c0_20 = arith.constant 0 : index
    %c0_21 = arith.constant 0 : index
    %40 = vector.load %arg8[%c0_20, %c0_21] : memref<16x32xf32, #tpu.memory_space<vmem>>, vector<16x32xf32>
    tpu.vector_store %arg8[%c0_20, %c0_21], %39 {strides = array<i32>} : memref<16x32xf32, #tpu.memory_space<vmem>>, vector<16x32xf32>,
    return
  }
  func.func @transform_0(%arg0: i32) -> (i32, i32) {
    %c0_i32 = arith.constant 0 : i32
    %c0_i32_0 = arith.constant 0 : i32
    return %arg0, %c0_i32 : i32, i32
  }
  func.func @transform_1(%arg0: i32) -> (i32, i32) {
    %c0_i32 = arith.constant 0 : i32
    %c0_i32_0 = arith.constant 0 : i32
    %c0_i32_1 = arith.constant 0 : i32
    return %c0_i32, %c0_i32_0 : i32, i32
  }
  func.func @transform_2(%arg0: i32) -> (i32, i32) {
    %c0_i32 = arith.constant 0 : i32
    %c0_i32_0 = arith.constant 0 : i32
    %c0_i32_1 = arith.constant 0 : i32
    return %c0_i32, %c0_i32_0 : i32, i32
  }
  func.func @transform_3(%arg0: i32) -> (i32, i32) {
    %c0_i32 = arith.constant 0 : i32
    %c0_i32_0 = arith.constant 0 : i32
    %c0_i32_1 = arith.constant 0 : i32
    return %c0_i32, %c0_i32_0 : i32, i32
  }
  func.func @transform_4(%arg0: i32) -> (i32, i32) {
    %c0_i32 = arith.constant 0 : i32
    %c0_i32_0 = arith.constant 0 : i32
    %c0_i32_1 = arith.constant 0 : i32
    return %c0_i32, %c0_i32_0 : i32, i32
  }
  func.func @transform_5(%arg0: i32) -> (i32, i32) {
    %c0_i32 = arith.constant 0 : i32
    %c0_i32_0 = arith.constant 0 : i32
    %c0_i32_1 = arith.constant 0 : i32
    return %c0_i32, %c0_i32_0 : i32, i32
  }
  func.func @transform_6(%arg0: i32) -> (i32, i32) {
    %c0_i32 = arith.constant 0 : i32
    %c0_i32_0 = arith.constant 0 : i32
    %c0_i32_1 = arith.constant 0 : i32
    return %c0_i32, %c0_i32_0 : i32, i32
  }
  func.func @transform_7(%arg0: i32) -> (i32, i32) {
    %c0_i32 = arith.constant 0 : i32
    %c0_i32_0 = arith.constant 0 : i32
    return %arg0, %c0_i32 : i32, i32
  }
}

module attributes {stable_mosaic.version = 11 : i64} {
  func.func @_self_attn_layer_kernel(%arg0: i32, %arg1: memref<1x8x32xf32, #tpu.memory_space<vmem>>, %arg2: memref<1x32xf32, #tpu.memory_space<vmem>>, %arg3: memref<1x32xf32, #tpu.memory_space<vmem>>, %arg4: memref<32x96xbf16, #tpu.memory_space<vmem>>, %arg5: memref<1x96xf32, #tpu.memory_space<vmem>>, %arg6: memref<32x32xbf16, #tpu.memory_space<vmem>>, %arg7: memref<1x32xf32, #tpu.memory_space<vmem>>, %arg8: memref<1x8x32xf32, #tpu.memory_space<vmem>>) attributes {dimension_semantics = [#tpu.dimension_semantics<parallel>], iteration_bounds = array<i64: 2>, scalar_prefetch = 0 : i64, scratch_operands = 0 : i64, tpu.core_type = #tpu.core_type<tc>, window_params = [{transform_indices = @transform_0, window_bounds = array<i64: 1, 8, 32>}, {pipeline_mode = #tpu.pipeline_mode<synchronous>, transform_indices = @transform_1, window_bounds = array<i64: 1, 32>}, {pipeline_mode = #tpu.pipeline_mode<synchronous>, transform_indices = @transform_2, window_bounds = array<i64: 1, 32>}, {pipeline_mode = #tpu.pipeline_mode<synchronous>, transform_indices = @transform_3, window_bounds = array<i64: 32, 96>}, {pipeline_mode = #tpu.pipeline_mode<synchronous>, transform_indices = @transform_4, window_bounds = array<i64: 1, 96>}, {pipeline_mode = #tpu.pipeline_mode<synchronous>, transform_indices = @transform_5, window_bounds = array<i64: 32, 32>}, {pipeline_mode = #tpu.pipeline_mode<synchronous>, transform_indices = @transform_6, window_bounds = array<i64: 1, 32>}, {transform_indices = @transform_7, window_bounds = array<i64: 1, 8, 32>}]} {
    %c0 = arith.constant 0 : index
    %c0_0 = arith.constant 0 : index
    %c0_1 = arith.constant 0 : index
    %0 = vector.load %arg1[%c0, %c0_0, %c0_1] : memref<1x8x32xf32, #tpu.memory_space<vmem>>, vector<1x8x32xf32>
    %1 = vector.shape_cast %0 : vector<1x8x32xf32> to vector<8x32xf32>
    %c0_2 = arith.constant 0 : index
    %c0_3 = arith.constant 0 : index
    %2 = vector.load %arg2[%c0_2, %c0_3] : memref<1x32xf32, #tpu.memory_space<vmem>>, vector<1x32xf32>
    %c0_4 = arith.constant 0 : index
    %c0_5 = arith.constant 0 : index
    %3 = vector.load %arg3[%c0_4, %c0_5] : memref<1x32xf32, #tpu.memory_space<vmem>>, vector<1x32xf32>
    %cst = arith.constant dense<0.000000e+00> : vector<8xf32>
    %4 = vector.multi_reduction <add>, %1, %cst [1] : vector<8x32xf32> to vector<8xf32>
    %5 = vector.shape_cast %4 : vector<8xf32> to vector<8x1xf32>
    %cst_6 = arith.constant 3.200000e+01 : f32
    %6 = vector.broadcast %cst_6 : f32 to vector<8x1xf32>
    %7 = arith.divf %5, %6 : vector<8x1xf32>
    %8 = vector.broadcast %7 : vector<8x1xf32> to vector<8x32xf32>
    %9 = arith.subf %1, %8 : vector<8x32xf32>
    %10 = arith.mulf %9, %9 : vector<8x32xf32>
    %cst_7 = arith.constant dense<0.000000e+00> : vector<8xf32>
    %11 = vector.multi_reduction <add>, %10, %cst_7 [1] : vector<8x32xf32> to vector<8xf32>
    %12 = vector.shape_cast %11 : vector<8xf32> to vector<8x1xf32>
    %cst_8 = arith.constant 3.200000e+01 : f32
    %13 = vector.broadcast %cst_8 : f32 to vector<8x1xf32>
    %14 = arith.divf %12, %13 : vector<8x1xf32>
    %15 = vector.broadcast %7 : vector<8x1xf32> to vector<8x32xf32>
    %16 = arith.subf %1, %15 : vector<8x32xf32>
    %cst_9 = arith.constant 9.99999974E-6 : f32
    %17 = vector.broadcast %cst_9 : f32 to vector<8x1xf32>
    %18 = arith.addf %14, %17 : vector<8x1xf32>
    %19 = math.rsqrt %18 : vector<8x1xf32>
    %20 = vector.broadcast %19 : vector<8x1xf32> to vector<8x32xf32>
    %21 = arith.mulf %16, %20 : vector<8x32xf32>
    %22 = vector.broadcast %2 : vector<1x32xf32> to vector<8x32xf32>
    %23 = arith.mulf %21, %22 : vector<8x32xf32>
    %24 = vector.broadcast %3 : vector<1x32xf32> to vector<8x32xf32>
    %25 = arith.addf %23, %24 : vector<8x32xf32>
    %26 = arith.truncf %25 : vector<8x32xf32> to vector<8x32xbf16>
    %c0_10 = arith.constant 0 : index
    %c0_11 = arith.constant 0 : index
    %27 = vector.load %arg4[%c0_10, %c0_11] : memref<32x96xbf16, #tpu.memory_space<vmem>>, vector<32x96xbf16>
    %cst_12 = arith.constant dense<0.000000e+00> : vector<8x96xf32>
    %28 = tpu.matmul %26, %27, %cst_12 {dimension_numbers = #tpu.dot_dimension_numbers<[1], [0], [0], [1], [0, 0, 1, 1], [], []>} : vector<8x32xbf16>, vector<32x96xbf16>, vector<8x96xf32> -> vector<8x96xf32>
    %c0_13 = arith.constant 0 : index
    %c0_14 = arith.constant 0 : index
    %29 = vector.load %arg5[%c0_13, %c0_14] : memref<1x96xf32, #tpu.memory_space<vmem>>, vector<1x96xf32>
    %30 = vector.broadcast %29 : vector<1x96xf32> to vector<8x96xf32>
    %31 = arith.addf %28, %30 : vector<8x96xf32>
    %32 = vector.extract_strided_slice %31 {offsets = [0, 0], sizes = [8, 32], strides = [1, 1]} : vector<8x96xf32> to vector<8x32xf32>
    %33 = vector.extract_strided_slice %31 {offsets = [0, 32], sizes = [8, 32], strides = [1, 1]} : vector<8x96xf32> to vector<8x32xf32>
    %34 = vector.extract_strided_slice %31 {offsets = [0, 64], sizes = [8, 32], strides = [1, 1]} : vector<8x96xf32> to vector<8x32xf32>
    %35 = tpu.iota {dimensions = array<i32: 0>} : vector<8x8xi32>
    %36 = tpu.iota {dimensions = array<i32: 1>} : vector<8x8xi32>
    %37 = arith.cmpi sle, %36, %35 : vector<8x8xi32>
    %cst_15 = arith.constant 0.000000e+00 : f32
    %cst_16 = arith.constant -1.000000e+09 : f32
    %38 = vector.broadcast %cst_15 : f32 to vector<8x8xf32>
    %39 = vector.broadcast %cst_16 : f32 to vector<8x8xf32>
    %40 = arith.select %37, %38, %39 : vector<8x8xi1>, vector<8x8xf32>
    %41 = vector.extract_strided_slice %32 {offsets = [0, 0], sizes = [8, 8], strides = [1, 1]} : vector<8x32xf32> to vector<8x8xf32>
    %42 = arith.truncf %41 : vector<8x8xf32> to vector<8x8xbf16>
    %43 = vector.extract_strided_slice %33 {offsets = [0, 0], sizes = [8, 8], strides = [1, 1]} : vector<8x32xf32> to vector<8x8xf32>
    %44 = arith.truncf %43 : vector<8x8xf32> to vector<8x8xbf16>
    %45 = vector.extract_strided_slice %34 {offsets = [0, 0], sizes = [8, 8], strides = [1, 1]} : vector<8x32xf32> to vector<8x8xf32>
    %46 = arith.truncf %45 : vector<8x8xf32> to vector<8x8xbf16>
    %cst_17 = arith.constant dense<0.000000e+00> : vector<8x8xf32>
    %47 = tpu.matmul %42, %44, %cst_17 {dimension_numbers = #tpu.dot_dimension_numbers<[1], [1], [0], [0], [0, 0, 1, 0], [], []>} : vector<8x8xbf16>, vector<8x8xbf16>, vector<8x8xf32> -> vector<8x8xf32>
    %cst_18 = arith.constant 0.353553385 : f32
    %48 = vector.broadcast %cst_18 : f32 to vector<8x8xf32>
    %49 = arith.mulf %47, %48 : vector<8x8xf32>
    %50 = arith.addf %49, %40 : vector<8x8xf32>
    %cst_19 = arith.constant dense<0xFF800000> : vector<8xf32>
    %51 = vector.multi_reduction <maximumf>, %50, %cst_19 [1] : vector<8x8xf32> to vector<8xf32>
    %52 = vector.shape_cast %51 : vector<8xf32> to vector<8x1xf32>
    %53 = vector.broadcast %52 : vector<8x1xf32> to vector<8x8xf32>
    %54 = arith.subf %50, %53 : vector<8x8xf32>
    %55 = math.exp %54 : vector<8x8xf32>
    %cst_20 = arith.constant dense<0.000000e+00> : vector<8xf32>
    %56 = vector.multi_reduction <add>, %55, %cst_20 [1] : vector<8x8xf32> to vector<8xf32>
    %57 = vector.shape_cast %56 : vector<8xf32> to vector<8x1xf32>
    %58 = tpu.reciprocal %57 {approx = true} : vector<8x1xf32> -> vector<8x1xf32>
    %59 = vector.broadcast %58 : vector<8x1xf32> to vector<8x8xf32>
    %60 = arith.mulf %55, %59 : vector<8x8xf32>
    %61 = arith.truncf %60 : vector<8x8xf32> to vector<8x8xbf16>
    %cst_21 = arith.constant dense<0.000000e+00> : vector<8x8xf32>
    %62 = tpu.matmul %61, %46, %cst_21 {dimension_numbers = #tpu.dot_dimension_numbers<[1], [0], [0], [1], [0, 0, 1, 1], [], []>} : vector<8x8xbf16>, vector<8x8xbf16>, vector<8x8xf32> -> vector<8x8xf32>
    %63 = vector.extract_strided_slice %32 {offsets = [0, 8], sizes = [8, 8], strides = [1, 1]} : vector<8x32xf32> to vector<8x8xf32>
    %64 = arith.truncf %63 : vector<8x8xf32> to vector<8x8xbf16>
    %65 = vector.extract_strided_slice %33 {offsets = [0, 8], sizes = [8, 8], strides = [1, 1]} : vector<8x32xf32> to vector<8x8xf32>
    %66 = arith.truncf %65 : vector<8x8xf32> to vector<8x8xbf16>
    %67 = vector.extract_strided_slice %34 {offsets = [0, 8], sizes = [8, 8], strides = [1, 1]} : vector<8x32xf32> to vector<8x8xf32>
    %68 = arith.truncf %67 : vector<8x8xf32> to vector<8x8xbf16>
    %cst_22 = arith.constant dense<0.000000e+00> : vector<8x8xf32>
    %69 = tpu.matmul %64, %66, %cst_22 {dimension_numbers = #tpu.dot_dimension_numbers<[1], [1], [0], [0], [0, 0, 1, 0], [], []>} : vector<8x8xbf16>, vector<8x8xbf16>, vector<8x8xf32> -> vector<8x8xf32>
    %cst_23 = arith.constant 0.353553385 : f32
    %70 = vector.broadcast %cst_23 : f32 to vector<8x8xf32>
    %71 = arith.mulf %69, %70 : vector<8x8xf32>
    %72 = arith.addf %71, %40 : vector<8x8xf32>
    %cst_24 = arith.constant dense<0xFF800000> : vector<8xf32>
    %73 = vector.multi_reduction <maximumf>, %72, %cst_24 [1] : vector<8x8xf32> to vector<8xf32>
    %74 = vector.shape_cast %73 : vector<8xf32> to vector<8x1xf32>
    %75 = vector.broadcast %74 : vector<8x1xf32> to vector<8x8xf32>
    %76 = arith.subf %72, %75 : vector<8x8xf32>
    %77 = math.exp %76 : vector<8x8xf32>
    %cst_25 = arith.constant dense<0.000000e+00> : vector<8xf32>
    %78 = vector.multi_reduction <add>, %77, %cst_25 [1] : vector<8x8xf32> to vector<8xf32>
    %79 = vector.shape_cast %78 : vector<8xf32> to vector<8x1xf32>
    %80 = tpu.reciprocal %79 {approx = true} : vector<8x1xf32> -> vector<8x1xf32>
    %81 = vector.broadcast %80 : vector<8x1xf32> to vector<8x8xf32>
    %82 = arith.mulf %77, %81 : vector<8x8xf32>
    %83 = arith.truncf %82 : vector<8x8xf32> to vector<8x8xbf16>
    %cst_26 = arith.constant dense<0.000000e+00> : vector<8x8xf32>
    %84 = tpu.matmul %83, %68, %cst_26 {dimension_numbers = #tpu.dot_dimension_numbers<[1], [0], [0], [1], [0, 0, 1, 1], [], []>} : vector<8x8xbf16>, vector<8x8xbf16>, vector<8x8xf32> -> vector<8x8xf32>
    %85 = vector.extract_strided_slice %32 {offsets = [0, 16], sizes = [8, 8], strides = [1, 1]} : vector<8x32xf32> to vector<8x8xf32>
    %86 = arith.truncf %85 : vector<8x8xf32> to vector<8x8xbf16>
    %87 = vector.extract_strided_slice %33 {offsets = [0, 16], sizes = [8, 8], strides = [1, 1]} : vector<8x32xf32> to vector<8x8xf32>
    %88 = arith.truncf %87 : vector<8x8xf32> to vector<8x8xbf16>
    %89 = vector.extract_strided_slice %34 {offsets = [0, 16], sizes = [8, 8], strides = [1, 1]} : vector<8x32xf32> to vector<8x8xf32>
    %90 = arith.truncf %89 : vector<8x8xf32> to vector<8x8xbf16>
    %cst_27 = arith.constant dense<0.000000e+00> : vector<8x8xf32>
    %91 = tpu.matmul %86, %88, %cst_27 {dimension_numbers = #tpu.dot_dimension_numbers<[1], [1], [0], [0], [0, 0, 1, 0], [], []>} : vector<8x8xbf16>, vector<8x8xbf16>, vector<8x8xf32> -> vector<8x8xf32>
    %cst_28 = arith.constant 0.353553385 : f32
    %92 = vector.broadcast %cst_28 : f32 to vector<8x8xf32>
    %93 = arith.mulf %91, %92 : vector<8x8xf32>
    %94 = arith.addf %93, %40 : vector<8x8xf32>
    %cst_29 = arith.constant dense<0xFF800000> : vector<8xf32>
    %95 = vector.multi_reduction <maximumf>, %94, %cst_29 [1] : vector<8x8xf32> to vector<8xf32>
    %96 = vector.shape_cast %95 : vector<8xf32> to vector<8x1xf32>
    %97 = vector.broadcast %96 : vector<8x1xf32> to vector<8x8xf32>
    %98 = arith.subf %94, %97 : vector<8x8xf32>
    %99 = math.exp %98 : vector<8x8xf32>
    %cst_30 = arith.constant dense<0.000000e+00> : vector<8xf32>
    %100 = vector.multi_reduction <add>, %99, %cst_30 [1] : vector<8x8xf32> to vector<8xf32>
    %101 = vector.shape_cast %100 : vector<8xf32> to vector<8x1xf32>
    %102 = tpu.reciprocal %101 {approx = true} : vector<8x1xf32> -> vector<8x1xf32>
    %103 = vector.broadcast %102 : vector<8x1xf32> to vector<8x8xf32>
    %104 = arith.mulf %99, %103 : vector<8x8xf32>
    %105 = arith.truncf %104 : vector<8x8xf32> to vector<8x8xbf16>
    %cst_31 = arith.constant dense<0.000000e+00> : vector<8x8xf32>
    %106 = tpu.matmul %105, %90, %cst_31 {dimension_numbers = #tpu.dot_dimension_numbers<[1], [0], [0], [1], [0, 0, 1, 1], [], []>} : vector<8x8xbf16>, vector<8x8xbf16>, vector<8x8xf32> -> vector<8x8xf32>
    %107 = vector.extract_strided_slice %32 {offsets = [0, 24], sizes = [8, 8], strides = [1, 1]} : vector<8x32xf32> to vector<8x8xf32>
    %108 = arith.truncf %107 : vector<8x8xf32> to vector<8x8xbf16>
    %109 = vector.extract_strided_slice %33 {offsets = [0, 24], sizes = [8, 8], strides = [1, 1]} : vector<8x32xf32> to vector<8x8xf32>
    %110 = arith.truncf %109 : vector<8x8xf32> to vector<8x8xbf16>
    %111 = vector.extract_strided_slice %34 {offsets = [0, 24], sizes = [8, 8], strides = [1, 1]} : vector<8x32xf32> to vector<8x8xf32>
    %112 = arith.truncf %111 : vector<8x8xf32> to vector<8x8xbf16>
    %cst_32 = arith.constant dense<0.000000e+00> : vector<8x8xf32>
    %113 = tpu.matmul %108, %110, %cst_32 {dimension_numbers = #tpu.dot_dimension_numbers<[1], [1], [0], [0], [0, 0, 1, 0], [], []>} : vector<8x8xbf16>, vector<8x8xbf16>, vector<8x8xf32> -> vector<8x8xf32>
    %cst_33 = arith.constant 0.353553385 : f32
    %114 = vector.broadcast %cst_33 : f32 to vector<8x8xf32>
    %115 = arith.mulf %113, %114 : vector<8x8xf32>
    %116 = arith.addf %115, %40 : vector<8x8xf32>
    %cst_34 = arith.constant dense<0xFF800000> : vector<8xf32>
    %117 = vector.multi_reduction <maximumf>, %116, %cst_34 [1] : vector<8x8xf32> to vector<8xf32>
    %118 = vector.shape_cast %117 : vector<8xf32> to vector<8x1xf32>
    %119 = vector.broadcast %118 : vector<8x1xf32> to vector<8x8xf32>
    %120 = arith.subf %116, %119 : vector<8x8xf32>
    %121 = math.exp %120 : vector<8x8xf32>
    %cst_35 = arith.constant dense<0.000000e+00> : vector<8xf32>
    %122 = vector.multi_reduction <add>, %121, %cst_35 [1] : vector<8x8xf32> to vector<8xf32>
    %123 = vector.shape_cast %122 : vector<8xf32> to vector<8x1xf32>
    %124 = tpu.reciprocal %123 {approx = true} : vector<8x1xf32> -> vector<8x1xf32>
    %125 = vector.broadcast %124 : vector<8x1xf32> to vector<8x8xf32>
    %126 = arith.mulf %121, %125 : vector<8x8xf32>
    %127 = arith.truncf %126 : vector<8x8xf32> to vector<8x8xbf16>
    %cst_36 = arith.constant dense<0.000000e+00> : vector<8x8xf32>
    %128 = tpu.matmul %127, %112, %cst_36 {dimension_numbers = #tpu.dot_dimension_numbers<[1], [0], [0], [1], [0, 0, 1, 1], [], []>} : vector<8x8xbf16>, vector<8x8xbf16>, vector<8x8xf32> -> vector<8x8xf32>
    %129 = tpu.concatenate %62, %84, %106, %128 in 1 : vector<8x8xf32>, vector<8x8xf32>, vector<8x8xf32>, vector<8x8xf32> -> vector<8x32xf32>
    %130 = arith.truncf %129 : vector<8x32xf32> to vector<8x32xbf16>
    %c0_37 = arith.constant 0 : index
    %c0_38 = arith.constant 0 : index
    %131 = vector.load %arg6[%c0_37, %c0_38] : memref<32x32xbf16, #tpu.memory_space<vmem>>, vector<32x32xbf16>
    %cst_39 = arith.constant dense<0.000000e+00> : vector<8x32xf32>
    %132 = tpu.matmul %130, %131, %cst_39 {dimension_numbers = #tpu.dot_dimension_numbers<[1], [0], [0], [1], [0, 0, 1, 1], [], []>} : vector<8x32xbf16>, vector<32x32xbf16>, vector<8x32xf32> -> vector<8x32xf32>
    %c0_40 = arith.constant 0 : index
    %c0_41 = arith.constant 0 : index
    %133 = vector.load %arg7[%c0_40, %c0_41] : memref<1x32xf32, #tpu.memory_space<vmem>>, vector<1x32xf32>
    %134 = vector.broadcast %133 : vector<1x32xf32> to vector<8x32xf32>
    %135 = arith.addf %132, %134 : vector<8x32xf32>
    %136 = arith.addf %1, %135 : vector<8x32xf32>
    %c0_42 = arith.constant 0 : index
    %c0_43 = arith.constant 0 : index
    %c0_44 = arith.constant 0 : index
    %137 = vector.load %arg8[%c0_42, %c0_43, %c0_44] : memref<1x8x32xf32, #tpu.memory_space<vmem>>, vector<1x8x32xf32>
    %138 = vector.shape_cast %137 : vector<1x8x32xf32> to vector<8x32xf32>
    %139 = vector.shape_cast %136 : vector<8x32xf32> to vector<1x8x32xf32>
    tpu.vector_store %arg8[%c0_42, %c0_43, %c0_44], %139 {strides = array<i32>} : memref<1x8x32xf32, #tpu.memory_space<vmem>>, vector<1x8x32xf32>,
    return
  }
  func.func @transform_0(%arg0: i32) -> (i32, i32, i32) {
    %c0_i32 = arith.constant 0 : i32
    %c0_i32_0 = arith.constant 0 : i32
    %c0_i32_1 = arith.constant 0 : i32
    return %arg0, %c0_i32, %c0_i32_0 : i32, i32, i32
  }
  func.func @transform_1(%arg0: i32) -> (i32, i32) {
    %c0_i32 = arith.constant 0 : i32
    %c0_i32_0 = arith.constant 0 : i32
    %c0_i32_1 = arith.constant 0 : i32
    return %c0_i32, %c0_i32_0 : i32, i32
  }
  func.func @transform_2(%arg0: i32) -> (i32, i32) {
    %c0_i32 = arith.constant 0 : i32
    %c0_i32_0 = arith.constant 0 : i32
    %c0_i32_1 = arith.constant 0 : i32
    return %c0_i32, %c0_i32_0 : i32, i32
  }
  func.func @transform_3(%arg0: i32) -> (i32, i32) {
    %c0_i32 = arith.constant 0 : i32
    %c0_i32_0 = arith.constant 0 : i32
    %c0_i32_1 = arith.constant 0 : i32
    return %c0_i32, %c0_i32_0 : i32, i32
  }
  func.func @transform_4(%arg0: i32) -> (i32, i32) {
    %c0_i32 = arith.constant 0 : i32
    %c0_i32_0 = arith.constant 0 : i32
    %c0_i32_1 = arith.constant 0 : i32
    return %c0_i32, %c0_i32_0 : i32, i32
  }
  func.func @transform_5(%arg0: i32) -> (i32, i32) {
    %c0_i32 = arith.constant 0 : i32
    %c0_i32_0 = arith.constant 0 : i32
    %c0_i32_1 = arith.constant 0 : i32
    return %c0_i32, %c0_i32_0 : i32, i32
  }
  func.func @transform_6(%arg0: i32) -> (i32, i32) {
    %c0_i32 = arith.constant 0 : i32
    %c0_i32_0 = arith.constant 0 : i32
    %c0_i32_1 = arith.constant 0 : i32
    return %c0_i32, %c0_i32_0 : i32, i32
  }
  func.func @transform_7(%arg0: i32) -> (i32, i32, i32) {
    %c0_i32 = arith.constant 0 : i32
    %c0_i32_0 = arith.constant 0 : i32
    %c0_i32_1 = arith.constant 0 : i32
    return %arg0, %c0_i32, %c0_i32_0 : i32, i32, i32
  }
}

module attributes {stable_mosaic.version = 11 : i64} {
  func.func @_cross_attn_layer_kernel(%arg0: i32, %arg1: memref<1x8x32xf32, #tpu.memory_space<vmem>>, %arg2: memref<1x32xf32, #tpu.memory_space<vmem>>, %arg3: memref<1x32xf32, #tpu.memory_space<vmem>>, %arg4: memref<32x32xbf16, #tpu.memory_space<vmem>>, %arg5: memref<1x32xf32, #tpu.memory_space<vmem>>, %arg6: memref<1x16x32xf32, #tpu.memory_space<vmem>>, %arg7: memref<32x64xbf16, #tpu.memory_space<vmem>>, %arg8: memref<1x64xf32, #tpu.memory_space<vmem>>, %arg9: memref<32x32xbf16, #tpu.memory_space<vmem>>, %arg10: memref<1x32xf32, #tpu.memory_space<vmem>>, %arg11: memref<1x8x32xf32, #tpu.memory_space<vmem>>) attributes {dimension_semantics = [#tpu.dimension_semantics<parallel>], iteration_bounds = array<i64: 2>, scalar_prefetch = 0 : i64, scratch_operands = 0 : i64, tpu.core_type = #tpu.core_type<tc>, window_params = [{transform_indices = @transform_0, window_bounds = array<i64: 1, 8, 32>}, {pipeline_mode = #tpu.pipeline_mode<synchronous>, transform_indices = @transform_1, window_bounds = array<i64: 1, 32>}, {pipeline_mode = #tpu.pipeline_mode<synchronous>, transform_indices = @transform_2, window_bounds = array<i64: 1, 32>}, {pipeline_mode = #tpu.pipeline_mode<synchronous>, transform_indices = @transform_3, window_bounds = array<i64: 32, 32>}, {pipeline_mode = #tpu.pipeline_mode<synchronous>, transform_indices = @transform_4, window_bounds = array<i64: 1, 32>}, {transform_indices = @transform_5, window_bounds = array<i64: 1, 16, 32>}, {pipeline_mode = #tpu.pipeline_mode<synchronous>, transform_indices = @transform_6, window_bounds = array<i64: 32, 64>}, {pipeline_mode = #tpu.pipeline_mode<synchronous>, transform_indices = @transform_7, window_bounds = array<i64: 1, 64>}, {pipeline_mode = #tpu.pipeline_mode<synchronous>, transform_indices = @transform_8, window_bounds = array<i64: 32, 32>}, {pipeline_mode = #tpu.pipeline_mode<synchronous>, transform_indices = @transform_9, window_bounds = array<i64: 1, 32>}, {transform_indices = @transform_10, window_bounds = array<i64: 1, 8, 32>}]} {
    %c0 = arith.constant 0 : index
    %c0_0 = arith.constant 0 : index
    %c0_1 = arith.constant 0 : index
    %0 = vector.load %arg1[%c0, %c0_0, %c0_1] : memref<1x8x32xf32, #tpu.memory_space<vmem>>, vector<1x8x32xf32>
    %1 = vector.shape_cast %0 : vector<1x8x32xf32> to vector<8x32xf32>
    %c0_2 = arith.constant 0 : index
    %c0_3 = arith.constant 0 : index
    %2 = vector.load %arg2[%c0_2, %c0_3] : memref<1x32xf32, #tpu.memory_space<vmem>>, vector<1x32xf32>
    %c0_4 = arith.constant 0 : index
    %c0_5 = arith.constant 0 : index
    %3 = vector.load %arg3[%c0_4, %c0_5] : memref<1x32xf32, #tpu.memory_space<vmem>>, vector<1x32xf32>
    %cst = arith.constant dense<0.000000e+00> : vector<8xf32>
    %4 = vector.multi_reduction <add>, %1, %cst [1] : vector<8x32xf32> to vector<8xf32>
    %5 = vector.shape_cast %4 : vector<8xf32> to vector<8x1xf32>
    %cst_6 = arith.constant 3.200000e+01 : f32
    %6 = vector.broadcast %cst_6 : f32 to vector<8x1xf32>
    %7 = arith.divf %5, %6 : vector<8x1xf32>
    %8 = vector.broadcast %7 : vector<8x1xf32> to vector<8x32xf32>
    %9 = arith.subf %1, %8 : vector<8x32xf32>
    %10 = arith.mulf %9, %9 : vector<8x32xf32>
    %cst_7 = arith.constant dense<0.000000e+00> : vector<8xf32>
    %11 = vector.multi_reduction <add>, %10, %cst_7 [1] : vector<8x32xf32> to vector<8xf32>
    %12 = vector.shape_cast %11 : vector<8xf32> to vector<8x1xf32>
    %cst_8 = arith.constant 3.200000e+01 : f32
    %13 = vector.broadcast %cst_8 : f32 to vector<8x1xf32>
    %14 = arith.divf %12, %13 : vector<8x1xf32>
    %15 = vector.broadcast %7 : vector<8x1xf32> to vector<8x32xf32>
    %16 = arith.subf %1, %15 : vector<8x32xf32>
    %cst_9 = arith.constant 9.99999974E-6 : f32
    %17 = vector.broadcast %cst_9 : f32 to vector<8x1xf32>
    %18 = arith.addf %14, %17 : vector<8x1xf32>
    %19 = math.rsqrt %18 : vector<8x1xf32>
    %20 = vector.broadcast %19 : vector<8x1xf32> to vector<8x32xf32>
    %21 = arith.mulf %16, %20 : vector<8x32xf32>
    %22 = vector.broadcast %2 : vector<1x32xf32> to vector<8x32xf32>
    %23 = arith.mulf %21, %22 : vector<8x32xf32>
    %24 = vector.broadcast %3 : vector<1x32xf32> to vector<8x32xf32>
    %25 = arith.addf %23, %24 : vector<8x32xf32>
    %26 = arith.truncf %25 : vector<8x32xf32> to vector<8x32xbf16>
    %c0_10 = arith.constant 0 : index
    %c0_11 = arith.constant 0 : index
    %27 = vector.load %arg4[%c0_10, %c0_11] : memref<32x32xbf16, #tpu.memory_space<vmem>>, vector<32x32xbf16>
    %cst_12 = arith.constant dense<0.000000e+00> : vector<8x32xf32>
    %28 = tpu.matmul %26, %27, %cst_12 {dimension_numbers = #tpu.dot_dimension_numbers<[1], [0], [0], [1], [0, 0, 1, 1], [], []>} : vector<8x32xbf16>, vector<32x32xbf16>, vector<8x32xf32> -> vector<8x32xf32>
    %c0_13 = arith.constant 0 : index
    %c0_14 = arith.constant 0 : index
    %29 = vector.load %arg5[%c0_13, %c0_14] : memref<1x32xf32, #tpu.memory_space<vmem>>, vector<1x32xf32>
    %30 = vector.broadcast %29 : vector<1x32xf32> to vector<8x32xf32>
    %31 = arith.addf %28, %30 : vector<8x32xf32>
    %c0_15 = arith.constant 0 : index
    %c0_16 = arith.constant 0 : index
    %c0_17 = arith.constant 0 : index
    %32 = vector.load %arg6[%c0_15, %c0_16, %c0_17] : memref<1x16x32xf32, #tpu.memory_space<vmem>>, vector<1x16x32xf32>
    %33 = vector.shape_cast %32 : vector<1x16x32xf32> to vector<16x32xf32>
    %34 = arith.truncf %33 : vector<16x32xf32> to vector<16x32xbf16>
    %c0_18 = arith.constant 0 : index
    %c0_19 = arith.constant 0 : index
    %35 = vector.load %arg7[%c0_18, %c0_19] : memref<32x64xbf16, #tpu.memory_space<vmem>>, vector<32x64xbf16>
    %cst_20 = arith.constant dense<0.000000e+00> : vector<16x64xf32>
    %36 = tpu.matmul %34, %35, %cst_20 {dimension_numbers = #tpu.dot_dimension_numbers<[1], [0], [0], [1], [0, 0, 1, 1], [], []>} : vector<16x32xbf16>, vector<32x64xbf16>, vector<16x64xf32> -> vector<16x64xf32>
    %c0_21 = arith.constant 0 : index
    %c0_22 = arith.constant 0 : index
    %37 = vector.load %arg8[%c0_21, %c0_22] : memref<1x64xf32, #tpu.memory_space<vmem>>, vector<1x64xf32>
    %38 = vector.broadcast %37 : vector<1x64xf32> to vector<16x64xf32>
    %39 = arith.addf %36, %38 : vector<16x64xf32>
    %40 = vector.extract_strided_slice %39 {offsets = [0, 0], sizes = [16, 32], strides = [1, 1]} : vector<16x64xf32> to vector<16x32xf32>
    %41 = vector.extract_strided_slice %39 {offsets = [0, 32], sizes = [16, 32], strides = [1, 1]} : vector<16x64xf32> to vector<16x32xf32>
    %42 = vector.extract_strided_slice %31 {offsets = [0, 0], sizes = [8, 8], strides = [1, 1]} : vector<8x32xf32> to vector<8x8xf32>
    %43 = arith.truncf %42 : vector<8x8xf32> to vector<8x8xbf16>
    %44 = vector.extract_strided_slice %40 {offsets = [0, 0], sizes = [16, 8], strides = [1, 1]} : vector<16x32xf32> to vector<16x8xf32>
    %45 = arith.truncf %44 : vector<16x8xf32> to vector<16x8xbf16>
    %46 = vector.extract_strided_slice %41 {offsets = [0, 0], sizes = [16, 8], strides = [1, 1]} : vector<16x32xf32> to vector<16x8xf32>
    %47 = arith.truncf %46 : vector<16x8xf32> to vector<16x8xbf16>
    %cst_23 = arith.constant dense<0.000000e+00> : vector<8x16xf32>
    %48 = tpu.matmul %43, %45, %cst_23 {dimension_numbers = #tpu.dot_dimension_numbers<[1], [1], [0], [0], [0, 0, 1, 0], [], []>} : vector<8x8xbf16>, vector<16x8xbf16>, vector<8x16xf32> -> vector<8x16xf32>
    %cst_24 = arith.constant 0.353553385 : f32
    %49 = vector.broadcast %cst_24 : f32 to vector<8x16xf32>
    %50 = arith.mulf %48, %49 : vector<8x16xf32>
    %cst_25 = arith.constant dense<0xFF800000> : vector<8xf32>
    %51 = vector.multi_reduction <maximumf>, %50, %cst_25 [1] : vector<8x16xf32> to vector<8xf32>
    %52 = vector.shape_cast %51 : vector<8xf32> to vector<8x1xf32>
    %53 = vector.broadcast %52 : vector<8x1xf32> to vector<8x16xf32>
    %54 = arith.subf %50, %53 : vector<8x16xf32>
    %55 = math.exp %54 : vector<8x16xf32>
    %cst_26 = arith.constant dense<0.000000e+00> : vector<8xf32>
    %56 = vector.multi_reduction <add>, %55, %cst_26 [1] : vector<8x16xf32> to vector<8xf32>
    %57 = vector.shape_cast %56 : vector<8xf32> to vector<8x1xf32>
    %58 = tpu.reciprocal %57 {approx = true} : vector<8x1xf32> -> vector<8x1xf32>
    %59 = vector.broadcast %58 : vector<8x1xf32> to vector<8x16xf32>
    %60 = arith.mulf %55, %59 : vector<8x16xf32>
    %61 = arith.truncf %60 : vector<8x16xf32> to vector<8x16xbf16>
    %cst_27 = arith.constant dense<0.000000e+00> : vector<8x8xf32>
    %62 = tpu.matmul %61, %47, %cst_27 {dimension_numbers = #tpu.dot_dimension_numbers<[1], [0], [0], [1], [0, 0, 1, 1], [], []>} : vector<8x16xbf16>, vector<16x8xbf16>, vector<8x8xf32> -> vector<8x8xf32>
    %63 = vector.extract_strided_slice %31 {offsets = [0, 8], sizes = [8, 8], strides = [1, 1]} : vector<8x32xf32> to vector<8x8xf32>
    %64 = arith.truncf %63 : vector<8x8xf32> to vector<8x8xbf16>
    %65 = vector.extract_strided_slice %40 {offsets = [0, 8], sizes = [16, 8], strides = [1, 1]} : vector<16x32xf32> to vector<16x8xf32>
    %66 = arith.truncf %65 : vector<16x8xf32> to vector<16x8xbf16>
    %67 = vector.extract_strided_slice %41 {offsets = [0, 8], sizes = [16, 8], strides = [1, 1]} : vector<16x32xf32> to vector<16x8xf32>
    %68 = arith.truncf %67 : vector<16x8xf32> to vector<16x8xbf16>
    %cst_28 = arith.constant dense<0.000000e+00> : vector<8x16xf32>
    %69 = tpu.matmul %64, %66, %cst_28 {dimension_numbers = #tpu.dot_dimension_numbers<[1], [1], [0], [0], [0, 0, 1, 0], [], []>} : vector<8x8xbf16>, vector<16x8xbf16>, vector<8x16xf32> -> vector<8x16xf32>
    %cst_29 = arith.constant 0.353553385 : f32
    %70 = vector.broadcast %cst_29 : f32 to vector<8x16xf32>
    %71 = arith.mulf %69, %70 : vector<8x16xf32>
    %cst_30 = arith.constant dense<0xFF800000> : vector<8xf32>
    %72 = vector.multi_reduction <maximumf>, %71, %cst_30 [1] : vector<8x16xf32> to vector<8xf32>
    %73 = vector.shape_cast %72 : vector<8xf32> to vector<8x1xf32>
    %74 = vector.broadcast %73 : vector<8x1xf32> to vector<8x16xf32>
    %75 = arith.subf %71, %74 : vector<8x16xf32>
    %76 = math.exp %75 : vector<8x16xf32>
    %cst_31 = arith.constant dense<0.000000e+00> : vector<8xf32>
    %77 = vector.multi_reduction <add>, %76, %cst_31 [1] : vector<8x16xf32> to vector<8xf32>
    %78 = vector.shape_cast %77 : vector<8xf32> to vector<8x1xf32>
    %79 = tpu.reciprocal %78 {approx = true} : vector<8x1xf32> -> vector<8x1xf32>
    %80 = vector.broadcast %79 : vector<8x1xf32> to vector<8x16xf32>
    %81 = arith.mulf %76, %80 : vector<8x16xf32>
    %82 = arith.truncf %81 : vector<8x16xf32> to vector<8x16xbf16>
    %cst_32 = arith.constant dense<0.000000e+00> : vector<8x8xf32>
    %83 = tpu.matmul %82, %68, %cst_32 {dimension_numbers = #tpu.dot_dimension_numbers<[1], [0], [0], [1], [0, 0, 1, 1], [], []>} : vector<8x16xbf16>, vector<16x8xbf16>, vector<8x8xf32> -> vector<8x8xf32>
    %84 = vector.extract_strided_slice %31 {offsets = [0, 16], sizes = [8, 8], strides = [1, 1]} : vector<8x32xf32> to vector<8x8xf32>
    %85 = arith.truncf %84 : vector<8x8xf32> to vector<8x8xbf16>
    %86 = vector.extract_strided_slice %40 {offsets = [0, 16], sizes = [16, 8], strides = [1, 1]} : vector<16x32xf32> to vector<16x8xf32>
    %87 = arith.truncf %86 : vector<16x8xf32> to vector<16x8xbf16>
    %88 = vector.extract_strided_slice %41 {offsets = [0, 16], sizes = [16, 8], strides = [1, 1]} : vector<16x32xf32> to vector<16x8xf32>
    %89 = arith.truncf %88 : vector<16x8xf32> to vector<16x8xbf16>
    %cst_33 = arith.constant dense<0.000000e+00> : vector<8x16xf32>
    %90 = tpu.matmul %85, %87, %cst_33 {dimension_numbers = #tpu.dot_dimension_numbers<[1], [1], [0], [0], [0, 0, 1, 0], [], []>} : vector<8x8xbf16>, vector<16x8xbf16>, vector<8x16xf32> -> vector<8x16xf32>
    %cst_34 = arith.constant 0.353553385 : f32
    %91 = vector.broadcast %cst_34 : f32 to vector<8x16xf32>
    %92 = arith.mulf %90, %91 : vector<8x16xf32>
    %cst_35 = arith.constant dense<0xFF800000> : vector<8xf32>
    %93 = vector.multi_reduction <maximumf>, %92, %cst_35 [1] : vector<8x16xf32> to vector<8xf32>
    %94 = vector.shape_cast %93 : vector<8xf32> to vector<8x1xf32>
    %95 = vector.broadcast %94 : vector<8x1xf32> to vector<8x16xf32>
    %96 = arith.subf %92, %95 : vector<8x16xf32>
    %97 = math.exp %96 : vector<8x16xf32>
    %cst_36 = arith.constant dense<0.000000e+00> : vector<8xf32>
    %98 = vector.multi_reduction <add>, %97, %cst_36 [1] : vector<8x16xf32> to vector<8xf32>
    %99 = vector.shape_cast %98 : vector<8xf32> to vector<8x1xf32>
    %100 = tpu.reciprocal %99 {approx = true} : vector<8x1xf32> -> vector<8x1xf32>
    %101 = vector.broadcast %100 : vector<8x1xf32> to vector<8x16xf32>
    %102 = arith.mulf %97, %101 : vector<8x16xf32>
    %103 = arith.truncf %102 : vector<8x16xf32> to vector<8x16xbf16>
    %cst_37 = arith.constant dense<0.000000e+00> : vector<8x8xf32>
    %104 = tpu.matmul %103, %89, %cst_37 {dimension_numbers = #tpu.dot_dimension_numbers<[1], [0], [0], [1], [0, 0, 1, 1], [], []>} : vector<8x16xbf16>, vector<16x8xbf16>, vector<8x8xf32> -> vector<8x8xf32>
    %105 = vector.extract_strided_slice %31 {offsets = [0, 24], sizes = [8, 8], strides = [1, 1]} : vector<8x32xf32> to vector<8x8xf32>
    %106 = arith.truncf %105 : vector<8x8xf32> to vector<8x8xbf16>
    %107 = vector.extract_strided_slice %40 {offsets = [0, 24], sizes = [16, 8], strides = [1, 1]} : vector<16x32xf32> to vector<16x8xf32>
    %108 = arith.truncf %107 : vector<16x8xf32> to vector<16x8xbf16>
    %109 = vector.extract_strided_slice %41 {offsets = [0, 24], sizes = [16, 8], strides = [1, 1]} : vector<16x32xf32> to vector<16x8xf32>
    %110 = arith.truncf %109 : vector<16x8xf32> to vector<16x8xbf16>
    %cst_38 = arith.constant dense<0.000000e+00> : vector<8x16xf32>
    %111 = tpu.matmul %106, %108, %cst_38 {dimension_numbers = #tpu.dot_dimension_numbers<[1], [1], [0], [0], [0, 0, 1, 0], [], []>} : vector<8x8xbf16>, vector<16x8xbf16>, vector<8x16xf32> -> vector<8x16xf32>
    %cst_39 = arith.constant 0.353553385 : f32
    %112 = vector.broadcast %cst_39 : f32 to vector<8x16xf32>
    %113 = arith.mulf %111, %112 : vector<8x16xf32>
    %cst_40 = arith.constant dense<0xFF800000> : vector<8xf32>
    %114 = vector.multi_reduction <maximumf>, %113, %cst_40 [1] : vector<8x16xf32> to vector<8xf32>
    %115 = vector.shape_cast %114 : vector<8xf32> to vector<8x1xf32>
    %116 = vector.broadcast %115 : vector<8x1xf32> to vector<8x16xf32>
    %117 = arith.subf %113, %116 : vector<8x16xf32>
    %118 = math.exp %117 : vector<8x16xf32>
    %cst_41 = arith.constant dense<0.000000e+00> : vector<8xf32>
    %119 = vector.multi_reduction <add>, %118, %cst_41 [1] : vector<8x16xf32> to vector<8xf32>
    %120 = vector.shape_cast %119 : vector<8xf32> to vector<8x1xf32>
    %121 = tpu.reciprocal %120 {approx = true} : vector<8x1xf32> -> vector<8x1xf32>
    %122 = vector.broadcast %121 : vector<8x1xf32> to vector<8x16xf32>
    %123 = arith.mulf %118, %122 : vector<8x16xf32>
    %124 = arith.truncf %123 : vector<8x16xf32> to vector<8x16xbf16>
    %cst_42 = arith.constant dense<0.000000e+00> : vector<8x8xf32>
    %125 = tpu.matmul %124, %110, %cst_42 {dimension_numbers = #tpu.dot_dimension_numbers<[1], [0], [0], [1], [0, 0, 1, 1], [], []>} : vector<8x16xbf16>, vector<16x8xbf16>, vector<8x8xf32> -> vector<8x8xf32>
    %126 = tpu.concatenate %62, %83, %104, %125 in 1 : vector<8x8xf32>, vector<8x8xf32>, vector<8x8xf32>, vector<8x8xf32> -> vector<8x32xf32>
    %127 = arith.truncf %126 : vector<8x32xf32> to vector<8x32xbf16>
    %c0_43 = arith.constant 0 : index
    %c0_44 = arith.constant 0 : index
    %128 = vector.load %arg9[%c0_43, %c0_44] : memref<32x32xbf16, #tpu.memory_space<vmem>>, vector<32x32xbf16>
    %cst_45 = arith.constant dense<0.000000e+00> : vector<8x32xf32>
    %129 = tpu.matmul %127, %128, %cst_45 {dimension_numbers = #tpu.dot_dimension_numbers<[1], [0], [0], [1], [0, 0, 1, 1], [], []>} : vector<8x32xbf16>, vector<32x32xbf16>, vector<8x32xf32> -> vector<8x32xf32>
    %c0_46 = arith.constant 0 : index
    %c0_47 = arith.constant 0 : index
    %130 = vector.load %arg10[%c0_46, %c0_47] : memref<1x32xf32, #tpu.memory_space<vmem>>, vector<1x32xf32>
    %131 = vector.broadcast %130 : vector<1x32xf32> to vector<8x32xf32>
    %132 = arith.addf %129, %131 : vector<8x32xf32>
    %133 = arith.addf %1, %132 : vector<8x32xf32>
    %c0_48 = arith.constant 0 : index
    %c0_49 = arith.constant 0 : index
    %c0_50 = arith.constant 0 : index
    %134 = vector.load %arg11[%c0_48, %c0_49, %c0_50] : memref<1x8x32xf32, #tpu.memory_space<vmem>>, vector<1x8x32xf32>
    %135 = vector.shape_cast %134 : vector<1x8x32xf32> to vector<8x32xf32>
    %136 = vector.shape_cast %133 : vector<8x32xf32> to vector<1x8x32xf32>
    tpu.vector_store %arg11[%c0_48, %c0_49, %c0_50], %136 {strides = array<i32>} : memref<1x8x32xf32, #tpu.memory_space<vmem>>, vector<1x8x32xf32>,
    return
  }
  func.func @transform_0(%arg0: i32) -> (i32, i32, i32) {
    %c0_i32 = arith.constant 0 : i32
    %c0_i32_0 = arith.constant 0 : i32
    %c0_i32_1 = arith.constant 0 : i32
    return %arg0, %c0_i32, %c0_i32_0 : i32, i32, i32
  }
  func.func @transform_1(%arg0: i32) -> (i32, i32) {
    %c0_i32 = arith.constant 0 : i32
    %c0_i32_0 = arith.constant 0 : i32
    %c0_i32_1 = arith.constant 0 : i32
    return %c0_i32, %c0_i32_0 : i32, i32
  }
  func.func @transform_2(%arg0: i32) -> (i32, i32) {
    %c0_i32 = arith.constant 0 : i32
    %c0_i32_0 = arith.constant 0 : i32
    %c0_i32_1 = arith.constant 0 : i32
    return %c0_i32, %c0_i32_0 : i32, i32
  }
  func.func @transform_3(%arg0: i32) -> (i32, i32) {
    %c0_i32 = arith.constant 0 : i32
    %c0_i32_0 = arith.constant 0 : i32
    %c0_i32_1 = arith.constant 0 : i32
    return %c0_i32, %c0_i32_0 : i32, i32
  }
  func.func @transform_4(%arg0: i32) -> (i32, i32) {
    %c0_i32 = arith.constant 0 : i32
    %c0_i32_0 = arith.constant 0 : i32
    %c0_i32_1 = arith.constant 0 : i32
    return %c0_i32, %c0_i32_0 : i32, i32
  }
  func.func @transform_5(%arg0: i32) -> (i32, i32, i32) {
    %c0_i32 = arith.constant 0 : i32
    %c0_i32_0 = arith.constant 0 : i32
    %c0_i32_1 = arith.constant 0 : i32
    return %arg0, %c0_i32, %c0_i32_0 : i32, i32, i32
  }
  func.func @transform_6(%arg0: i32) -> (i32, i32) {
    %c0_i32 = arith.constant 0 : i32
    %c0_i32_0 = arith.constant 0 : i32
    %c0_i32_1 = arith.constant 0 : i32
    return %c0_i32, %c0_i32_0 : i32, i32
  }
  func.func @transform_7(%arg0: i32) -> (i32, i32) {
    %c0_i32 = arith.constant 0 : i32
    %c0_i32_0 = arith.constant 0 : i32
    %c0_i32_1 = arith.constant 0 : i32
    return %c0_i32, %c0_i32_0 : i32, i32
  }
  func.func @transform_8(%arg0: i32) -> (i32, i32) {
    %c0_i32 = arith.constant 0 : i32
    %c0_i32_0 = arith.constant 0 : i32
    %c0_i32_1 = arith.constant 0 : i32
    return %c0_i32, %c0_i32_0 : i32, i32
  }
  func.func @transform_9(%arg0: i32) -> (i32, i32) {
    %c0_i32 = arith.constant 0 : i32
    %c0_i32_0 = arith.constant 0 : i32
    %c0_i32_1 = arith.constant 0 : i32
    return %c0_i32, %c0_i32_0 : i32, i32
  }
  func.func @transform_10(%arg0: i32) -> (i32, i32, i32) {
    %c0_i32 = arith.constant 0 : i32
    %c0_i32_0 = arith.constant 0 : i32
    %c0_i32_1 = arith.constant 0 : i32
    return %arg0, %c0_i32, %c0_i32_0 : i32, i32, i32
  }
}

module attributes {stable_mosaic.version = 11 : i64} {
  func.func @_layernorm_kernel(%arg0: i32, %arg1: memref<16x32xf32, #tpu.memory_space<vmem>>, %arg2: memref<1x32xf32, #tpu.memory_space<vmem>>, %arg3: memref<1x32xf32, #tpu.memory_space<vmem>>, %arg4: memref<16x32xf32, #tpu.memory_space<vmem>>) attributes {dimension_semantics = [#tpu.dimension_semantics<parallel>], iteration_bounds = array<i64: 1>, scalar_prefetch = 0 : i64, scratch_operands = 0 : i64, tpu.core_type = #tpu.core_type<tc>, window_params = [{transform_indices = @transform_0, window_bounds = array<i64: 16, 32>}, {pipeline_mode = #tpu.pipeline_mode<synchronous>, transform_indices = @transform_1, window_bounds = array<i64: 1, 32>}, {pipeline_mode = #tpu.pipeline_mode<synchronous>, transform_indices = @transform_2, window_bounds = array<i64: 1, 32>}, {transform_indices = @transform_3, window_bounds = array<i64: 16, 32>}]} {
    %c0 = arith.constant 0 : index
    %c0_0 = arith.constant 0 : index
    %0 = vector.load %arg1[%c0, %c0_0] : memref<16x32xf32, #tpu.memory_space<vmem>>, vector<16x32xf32>
    %c0_1 = arith.constant 0 : index
    %c0_2 = arith.constant 0 : index
    %1 = vector.load %arg2[%c0_1, %c0_2] : memref<1x32xf32, #tpu.memory_space<vmem>>, vector<1x32xf32>
    %c0_3 = arith.constant 0 : index
    %c0_4 = arith.constant 0 : index
    %2 = vector.load %arg3[%c0_3, %c0_4] : memref<1x32xf32, #tpu.memory_space<vmem>>, vector<1x32xf32>
    %cst = arith.constant dense<0.000000e+00> : vector<16xf32>
    %3 = vector.multi_reduction <add>, %0, %cst [1] : vector<16x32xf32> to vector<16xf32>
    %4 = vector.shape_cast %3 : vector<16xf32> to vector<16x1xf32>
    %cst_5 = arith.constant 3.200000e+01 : f32
    %5 = vector.broadcast %cst_5 : f32 to vector<16x1xf32>
    %6 = arith.divf %4, %5 : vector<16x1xf32>
    %7 = vector.broadcast %6 : vector<16x1xf32> to vector<16x32xf32>
    %8 = arith.subf %0, %7 : vector<16x32xf32>
    %9 = arith.mulf %8, %8 : vector<16x32xf32>
    %cst_6 = arith.constant dense<0.000000e+00> : vector<16xf32>
    %10 = vector.multi_reduction <add>, %9, %cst_6 [1] : vector<16x32xf32> to vector<16xf32>
    %11 = vector.shape_cast %10 : vector<16xf32> to vector<16x1xf32>
    %cst_7 = arith.constant 3.200000e+01 : f32
    %12 = vector.broadcast %cst_7 : f32 to vector<16x1xf32>
    %13 = arith.divf %11, %12 : vector<16x1xf32>
    %14 = vector.broadcast %6 : vector<16x1xf32> to vector<16x32xf32>
    %15 = arith.subf %0, %14 : vector<16x32xf32>
    %cst_8 = arith.constant 9.99999974E-6 : f32
    %16 = vector.broadcast %cst_8 : f32 to vector<16x1xf32>
    %17 = arith.addf %13, %16 : vector<16x1xf32>
    %18 = math.rsqrt %17 : vector<16x1xf32>
    %19 = vector.broadcast %18 : vector<16x1xf32> to vector<16x32xf32>
    %20 = arith.mulf %15, %19 : vector<16x32xf32>
    %21 = vector.broadcast %1 : vector<1x32xf32> to vector<16x32xf32>
    %22 = arith.mulf %20, %21 : vector<16x32xf32>
    %23 = vector.broadcast %2 : vector<1x32xf32> to vector<16x32xf32>
    %24 = arith.addf %22, %23 : vector<16x32xf32>
    %c0_9 = arith.constant 0 : index
    %c0_10 = arith.constant 0 : index
    %25 = vector.load %arg4[%c0_9, %c0_10] : memref<16x32xf32, #tpu.memory_space<vmem>>, vector<16x32xf32>
    tpu.vector_store %arg4[%c0_9, %c0_10], %24 {strides = array<i32>} : memref<16x32xf32, #tpu.memory_space<vmem>>, vector<16x32xf32>,
    return
  }
  func.func @transform_0(%arg0: i32) -> (i32, i32) {
    %c0_i32 = arith.constant 0 : i32
    %c0_i32_0 = arith.constant 0 : i32
    return %arg0, %c0_i32 : i32, i32
  }
  func.func @transform_1(%arg0: i32) -> (i32, i32) {
    %c0_i32 = arith.constant 0 : i32
    %c0_i32_0 = arith.constant 0 : i32
    %c0_i32_1 = arith.constant 0 : i32
    return %c0_i32, %c0_i32_0 : i32, i32
  }
  func.func @transform_2(%arg0: i32) -> (i32, i32) {
    %c0_i32 = arith.constant 0 : i32
    %c0_i32_0 = arith.constant 0 : i32
    %c0_i32_1 = arith.constant 0 : i32
    return %c0_i32, %c0_i32_0 : i32, i32
  }
  func.func @transform_3(%arg0: i32) -> (i32, i32) {
    %c0_i32 = arith.constant 0 : i32
    %c0_i32_0 = arith.constant 0 : i32
    return %arg0, %c0_i32 : i32, i32
  }
}

</mosaic_0001>

<bundles_post_ra>
// kernel: causal_decoder_forward.9
= control target key start
LH: loop header
LB: loop body
LE: loop exit
PB: predicated region body
PF: predicated region fallthrough
CT: control target
= control target key end

     0   :  { %vm31_vm0 = vcmask 261120   ;;  %v290_v15 = vmov 0.0   ;;  %vm291_vm1 = vmmov 0   ;;  %vm185_vm2 = vcmask 523264   ;;  %s391_s0 = inlined_call_operand.vmem [shape: f32[16,32], index: 0, kind: input, shape index: {}]   ;;  %s392_s3 = inlined_call_operand.vmem [shape: bf16[32,64], index: 3, kind: input, shape index: {}]   ;;  %s393_s5 = inlined_call_operand.vmem [shape: bf16[64,32], index: 5, kind: input, shape index: {}]   ;;  %s394_s1 = inlined_call_operand.vmem [shape: f32[1,32], index: 1, kind: input, shape index: {}]   ;;  %s395_s2 = inlined_call_operand.vmem [shape: f32[1,32], index: 2, kind: input, shape index: {}]   ;;  %s396_s4 = inlined_call_operand.vmem [shape: f32[1,64], index: 4, kind: input, shape index: {}]   ;;  %s397_s6 = inlined_call_operand.vmem [shape: f32[1,32], index: 6, kind: input, shape index: {}]   ;;  %s398_s7 = inlined_call_operand.vmem [shape: f32[16,32], index: 7, kind: output, shape index: {}]  }
   0x1   :  { %v335_v0 = vld [vmem:[%s391_s0] sm:$0xff]  ;;  %v340_v1 = vld [vmem:[%s391_s0 + $0x8] sm:$0xff]  ;;  %258 = vmatprep.subr.bf16.mxu0 %v290_v15  ;;  %266 = vmatprep.subr.bf16.mxu1 %v290_v15  ;;  %v284_v36 = vld [vmem:[%s393_s5 + $0x10] sm:$0xff]  }
   0x2   :  { %v32_v2 = vsel %vm31_vm0, %v335_v0, 0.0  ;;  %v35_v3 = vsel %vm31_vm0, %v340_v1, 0.0  ;;  %v280_v14 = vld [vmem:[%s392_s3] sm:$0xff]   ;;  %v281_v16 = vld [vmem:[%s392_s3 + $0x8] sm:$0xff]   ;;  %262 = vmatprep.mubr.msk.bf16.mxu0 %vm291_vm1, %v290_v15  ;;  %274 = vmatprep.mubr.msk.bf16.mxu1 %vm291_vm1, %v290_v15  ;;  %v285_v37 = vld [vmem:[%s393_s5 + $0x18] sm:$0xff]  }
   0x3   :  { %33 = vadd.xlane.f32.xlu0 %v32_v2  ;;  %259 = vmatpush3.bf16.msra.mxu0 %v280_v14  ;;  %v282_v17 = vld [vmem:[%s393_s5] sm:$0xff]   ;;  %v283_v18 = vld [vmem:[%s393_s5 + $0x8] sm:$0xff]  }
   0x4   :  { %260 = vmatprep.subr.bf16.mxu0 %v290_v15  ;;  %267 = vmatpush3.bf16.msra.mxu1 %v282_v17  ;;  %v238_v27 = vld [vmem:[%s394_s1] ss:$0 sm:$0xff] }
   0x5   :  { %268 = vmatprep.subr.bf16.mxu1 %v290_v15  ;;  %v239_v31 = vld [vmem:[%s395_s2] ss:$0 sm:$0xff] }
   0x6   :  { %v240_v38 = vld [vmem:[%s396_s4] ss:$0 sm:$0xff] }
   0x7   :  { %36 = vadd.xlane.f32.xlu0 %v35_v3  ;;  %261 = vmatpush3.bf16.msra.mxu0 %v281_v16  ;;  %v244_v48 = vld [vmem:[%s397_s6] ss:$0 sm:$0xff] }
   0x8   :  { %269 = vmatpush3.bf16.msra.mxu1 %v283_v18 }
   0x9   :  { %270 = vmatprep.subr.bf16.mxu1 %v290_v15 }
   0xc   :  { %271 = vmatpush3.bf16.msra.mxu1 %v284_v36 }
   0xd   :  { %272 = vmatprep.subr.bf16.mxu1 %v290_v15 }
  0x10   :  { %273 = vmatpush3.bf16.msra.mxu1 %v285_v37 }
  0x90   :  { %v34_v4 = vpop.xlane.xlu0 %33 }
  0x91   :  { %v39_v5 = vmul.f32 0.03125, %v34_v4 }
  0x93   :  { %v41_v6 = vsub.f32 %v335_v0, %v39_v5 }
  0x94   :  { %v37_v7 = vpop.xlane.xlu0 %36 }
  0x95   :  { %v40_v8 = vmul.f32 0.03125, %v37_v7  ;;  %v43_v9 = vmul.f32 %v41_v6, %v41_v6 }
  0x97   :  { %v42_v10 = vsub.f32 %v340_v1, %v40_v8  ;;  %v45_v11 = vsel %vm31_vm0, %v43_v9, 0.0 }
  0x98   :  { %46 = vadd.xlane.f32.xlu1 %v45_v11 }
  0x99   :  { %v44_v12 = vmul.f32 %v42_v10, %v42_v10 }
  0x9b   :  { %v48_v13 = vsel %vm31_vm0, %v44_v12, 0.0 }
  0x9c   :  { %49 = vadd.xlane.f32.xlu1 %v48_v13 }
 0x125   :  { %v47_v19 = vpop.xlane.xlu1 %46 }
 0x126   :  { %v51_v20 = vmul.f32 0.03125, %v47_v19 }
 0x128   :  { %v53_v21 = vadd.f32 1e-05, %v51_v20 }
 0x129   :  { %v50_v22 = vpop.xlane.xlu1 %49 }
 0x12a   :  { %286 = vrsqrt.f32 %v53_v21  ;;  %v52_v23 = vmul.f32 0.03125, %v50_v22 }
 0x12c   :  { %v54_v24 = vadd.f32 1e-05, %v52_v23 }
 0x12e   :  { %288 = vrsqrt.f32 %v54_v24 }
 0x134   :  { %v287_v25 = vpop.eup %286 }
 0x135   :  { %v57_v26 = vmul.f32 %v287_v25, %v41_v6 }
 0x137   :  { %v65_v30 = vmul.f32 %v238_v27, %v57_v26 }
 0x138   :  { %v289_v28 = vpop.eup %288 }
 0x139   :  { %v58_v29 = vmul.f32 %v289_v28, %v42_v10  ;;  %v73_v33 = vadd.f32 %v239_v31, %v65_v30 }
 0x13b   :  { %v66_v32 = vmul.f32 %v238_v27, %v58_v29 }
 0x13d   :  { %v74_v34 = vadd.f32 %v239_v31, %v66_v32 }
 0x13f   :  { %v75_v35 = vpack.c.bf16 %v74_v34, %v73_v33 }
 0x141   :  { %263 = vmatmul.mubr.msk.bf16.vlgmr.msra.gmra.mrb[0].mxu0 %vm31_vm0, %v75_v35 }
 0x214   :  { %v136_v39 = vpop.f32.mrb[0].mxu0 }
 0x215   :  { %v137_v40 = vadd.f32 %v240_v38, %v136_v39  ;;  %v264_v41 = vpop.f32.mrb[1].mxu0 }
 0x216   :  { %v139_v42 = vpop.f32.mrb[2].mxu0 }
 0x217   :  { %v140_v43 = vadd.f32 %v240_v38, %v139_v42  ;;  %v265_v44 = vpop.f32.mrb[3].mxu0  ;;  %v143_v45 = vmax.f32 %v137_v40, 0.0 }
 0x219   :  { %v144_v46 = vmax.f32 %v140_v43, 0.0 }
 0x21b   :  { %v145_v47 = vpack.c.bf16 %v144_v46, %v143_v45 }
 0x21d   :  { %275 = vmatmul.mubr.msk.bf16.vlgmr.msra.gmra.mrb[0].mxu1 %vm185_vm2, %v145_v47 }
 0x2f0   :  { %v223_v49 = vpop.f32.mrb[0].mxu1 }
 0x2f1   :  { %v224_v50 = vadd.f32 %v244_v48, %v223_v49  ;;  %v276_v51 = vpop.f32.mrb[1].mxu1 }
 0x2f2   :  { %v226_v52 = vpop.f32.mrb[2].mxu1 }
 0x2f3   :  { %v230_v53 = vadd.f32 %v224_v50, %v335_v0  ;;  %v227_v54 = vadd.f32 %v244_v48, %v226_v52  ;;  %v277_v55 = vpop.f32.mrb[3].mxu1 }
 0x2f5   :  { %232 = vst.msk [vmem:[%s398_s7] sm:$0xff] %vm31_vm0, %v230_v53  ;;  %v231_v56 = vadd.f32 %v227_v54, %v340_v1 }
 0x2f7   :  { %233 = vst.msk [vmem:[%s398_s7 + $0x8] sm:$0xff] %vm31_vm0, %v231_v56 }

// kernel: causal_decoder_forward.8
= control target key start
LH: loop header
LB: loop body
LE: loop exit
PB: predicated region body
PF: predicated region fallthrough
CT: control target
= control target key end

     0   :  { %s1383_s13 = smov 0   ;;  %s1523_s0 = inlined_call_operand.vmem [shape: f32[2,8,32], index: 0, kind: input, shape index: {}]   ;;  %s1524_s1 = inlined_call_operand.vmem [shape: f32[1,32], index: 1, kind: input, shape index: {}]   ;;  %s1525_s2 = inlined_call_operand.vmem [shape: f32[1,32], index: 2, kind: input, shape index: {}]   ;;  %s1526_s3 = inlined_call_operand.vmem [shape: bf16[32,32], index: 3, kind: input, shape index: {}]   ;;  %s1527_s4 = inlined_call_operand.vmem [shape: f32[1,32], index: 4, kind: input, shape index: {}]   ;;  %s1528_s5 = inlined_call_operand.vmem [shape: f32[2,16,32], index: 5, kind: input, shape index: {}]   ;;  %s1529_s6 = inlined_call_operand.vmem [shape: bf16[32,64], index: 6, kind: input, shape index: {}]   ;;  %s1530_s7 = inlined_call_operand.vmem [shape: f32[1,64], index: 7, kind: input, shape index: {}]   ;;  %s1531_s8 = inlined_call_operand.vmem [shape: bf16[32,32], index: 8, kind: input, shape index: {}]   ;;  %s1532_s9 = inlined_call_operand.vmem [shape: f32[1,32], index: 9, kind: input, shape index: {}]   ;;  %s1533_s10 = inlined_call_operand.vmem [shape: f32[2,8,32], index: 10, kind: output, shape index: {}]  }
   0x1 LB: > { %s1133_s14 = sadd.s32 4294967295, %s1314_s13   ;;  %p1137_p0 = scmp.ge.s32.totalorder %s1314_s13, 1  ;;  %s1314_s13 = sphi %s1383_s13, %s20_s13  }
   0x2   : > { %p321_p1 = scmp.lt.s32.totalorder %s1314_s13, 3 }
   0x4   : > { %p322_p2 = pnand %p1137_p0, %p321_p1 }
   0x5   : > { %p362_p3 = scmp.lt.s32.totalorder (!%p322_p2), %s1133_s14, 1  ;;  %vm379_vm0 = vcmask (!%p322_p2), 261120   ;;  %v1284_v7 = vld [vmem:[%s1529_s6] sm:$0xff] (!%p322_p2)   ;;  %v1316_v8 = vmov (!%p322_p2), 0.0   ;;  %v1285_v9 = vld [vmem:[%s1529_s6 + $0x8] sm:$0xff] (!%p322_p2)   ;;  %vm1317_vm1 = vmmov (!%p322_p2), 0  }
   0x6   : > { %325 = sbr.rel (%p322_p2) target bundleno = 1793 (0x701), region = 60  ;;  %1200 = vmatprep.subr.bf16.mxu1 (!%p322_p2), %v1316_v8  ;;  %1192 = vmatprep.subr.bf16.mxu0 (!%p322_p2), %v1316_v8  ;;  %v1286_v12 = vld [vmem:[%s1526_s3] sm:$0xff] (!%p322_p2)   ;;  %v1287_v14 = vld [vmem:[%s1526_s3 + $0x8] sm:$0xff] (!%p322_p2)   ;;  %vm547_vm2 = vcmask (!%p322_p2), 64512   ;;  %s1318_s20 = smov (!%p322_p2), 120   ;;  %vm595_vm3 = vcmask (!%p322_p2), 130048  }
   0x7   : > { %1201 = vmatpush3.bf16.msra.mxu1 (!%p322_p2), %v1284_v7  ;;  %1204 = vmatprep.mubr.msk.bf16.mxu1 (!%p322_p2), %vm1317_vm1, %v1316_v8  ;;  %v1142_v19 = vld [vmem:[%s1524_s1] ss:$0 sm:$0xff] (!%p322_p2)  ;;  %s1319_s21 = smov (!%p322_p2), 112   ;;  %s1320_s24 = smov (!%p322_p2), 104   ;;  %vm997_vm4 = vcmask (!%p322_p2), 195584  }
   0x8   : > { %1202 = vmatprep.subr.bf16.mxu1 (!%p322_p2), %v1316_v8  ;;  %1196 = vmatprep.mubr.msk.bf16.mxu0 (!%p322_p2), %vm1317_vm1, %v1316_v8  ;;  %v1143_v21 = vld [vmem:[%s1525_s2] ss:$0 sm:$0xff] (!%p322_p2)  ;;  %s1321_s25 = smov (!%p322_p2), 88   ;;  %s1322_s26 = smov (!%p322_p2), 96  }
   0x9   : > { %1193 = vmatpush3.bf16.msra.mxu0 (!%p322_p2), %v1286_v12  ;;  %v1148_v25 = vld [vmem:[%s1530_s7] ss:$0 sm:$0xff] (!%p322_p2)  ;;  %s1323_s27 = smov (!%p322_p2), 72   ;;  %s1324_s28 = smov (!%p322_p2), 80  }
   0xa   : > { %1194 = vmatprep.subr.bf16.mxu0 (!%p322_p2), %v1316_v8  ;;  %v1144_v34 = vld [vmem:[%s1527_s4] ss:$0 sm:$0xff] (!%p322_p2)  ;;  %s1325_s29 = smov (!%p322_p2), 8   ;;  %s1326_s17 = smov (!%p322_p2), 16  }
   0xb   : > { %1203 = vmatpush3.bf16.msra.mxu1 (!%p322_p2), %v1285_v9 }
   0xc   : > { %1214 = vmatprep.subr.bf16.mxu1 (!%p322_p2), %v1316_v8 }
   0xd   : > { %s1535_s14 = smov (!%p362_p3, %s1133_s14), 1  ;;  %1195 = vmatpush3.bf16.msra.mxu0 %v1287_v14 }
   0xe   : > { %s1138_s15 = sshll.u32 %s1535_s14, 3  ;;  %s1166_s19 = sshll.u32 %s1535_s14, 4  ;;  %1208 = vmatprep.subr.bf16.mxu0 %v1316_v8 }
   0xf   : > { %s365_s18 = scalar_lea.vmem %s1523_s0, %s1138_s15  ;;  %s370_s22 = scalar_lea.vmem %s1528_s5, %s1166_s19 }
  0x10   : > { %v1399_v0 = vld [vmem:[%s365_s18] sm:$0xff]  ;;  %v476_v11 = vld [vmem:[%s370_s22 + $0x8] sm:$0xff]  ;;  %s1327_s18 = smov 24   ;;  %s374_s23 = scalar_lea.vmem %s1533_s10, %s1138_s15 }
  0x11   : > { %v380_v1 = vsel %vm379_vm0, %v1399_v0, 0.0  ;;  %v475_v10 = vld [vmem:[%s370_s22] sm:$0xff] }
  0x12   : > { %381 = vadd.xlane.f32.xlu0 %v380_v1  ;;  %v477_v13 = vpack.c.bf16 %v476_v11, %v475_v10 }
  0x14   : > { %1205 = vmatmul.mubr.msk.bf16.vlgmr.msra.gmra.mrb[0].mxu1 %vm379_vm0, %v477_v13 }
  0x15   : > { %1216 = vmatprep.mubr.msk.bf16.mxu1 %vm1317_vm1, %v1316_v8 }
  0x9f   : > { %v382_v2 = vpop.xlane.xlu0 %381 }
  0xa0   : > { %v384_v3 = vmul.f32 0.03125, %v382_v2 }
  0xa2   : > { %v385_v4 = vsub.f32 %v1399_v0, %v384_v3 }
  0xa4   : > { %v386_v5 = vmul.f32 %v385_v4, %v385_v4 }
  0xa6   : > { %v387_v6 = vsel %vm379_vm0, %v386_v5, 0.0 }
  0xa7   : > { %388 = vadd.xlane.f32.xlu0 %v387_v6 }
  0xe7   : > { %v538_v26 = vpop.f32.mrb[0].mxu1 }
  0xe8   : > { %v539_v27 = vadd.f32 %v1148_v25, %v538_v26  ;;  %v1206_v28 = vpop.f32.mrb[1].mxu1 }
  0xe9   : > { %v541_v29 = vpop.f32.mrb[2].mxu1 }
  0xea   : > { %v542_v30 = vadd.f32 %v1148_v25, %v541_v29  ;;  %v1207_v31 = vpop.f32.mrb[3].mxu1 }
  0xec   : > { %v1446_v32 = vpack.c.bf16 %v542_v30, %v539_v27 }
  0xee   : > { %658 = vrot.lane.b32.xlu1 %v1446_v32, %s1318_s20  ;;  %767 = vrot.lane.b32.xlu0 %v1446_v32, %s1319_s21  ;;  %v552_v33 = vsel %vm547_vm2, %v1446_v32, 0 }
 0x134   : > { %v389_v15 = vpop.xlane.xlu0 %388 }
 0x135   : > { %v390_v16 = vmul.f32 0.03125, %v389_v15 }
 0x137   : > { %v391_v17 = vadd.f32 1e-05, %v390_v16 }
 0x139   : > { %1290 = vrsqrt.f32 %v391_v17 }
 0x143   : > { %v1291_v18 = vpop.eup %1290 }
 0x144   : > { %v393_v20 = vmul.f32 %v1291_v18, %v385_v4 }
 0x146   : > { %v400_v22 = vmul.f32 %v1142_v19, %v393_v20 }
 0x148   : > { %v407_v23 = vadd.f32 %v1143_v21, %v400_v22 }
 0x14a   : > { %v408_v24 = vpack.c.bf16 %v407_v23, %v407_v23 }
 0x14c   : > { %1197 = vmatmul.mubr.msk.bf16.vlgmr.msra.gmra.mrb[0].mxu0 %vm379_vm0, %v408_v24 }
 0x14d   : > { %1210 = vmatprep.mubr.msk.bf16.mxu0 %vm1317_vm1, %v1316_v8  ;;  %1209 = vmatpush3.bf16.xpose.msra.mxu0 %v552_v33 }
 0x14e   : > { %1220 = vmatprep.subr.bf16.mxu0 %v1316_v8 }
 0x160   : > { %v659_v36 = vpop.permute.xlu1 %658  ;;  %v768_v43 = vpop.permute.xlu0 %767 }
 0x161   : > { %v664_v42 = vsel %vm547_vm2, %v659_v36, 0  ;;  %v773_v45 = vsel %vm547_vm2, %v768_v43, 0 }
 0x21f   : > { %v469_v35 = vpop.f32.mrb[0].mxu0 }
 0x220   : > { %v470_v37 = vadd.f32 %v1144_v34, %v469_v35  ;;  %v1198_v38 = vpop.f32.mrb[1].mxu0 }
 0x221   : > { %v472_v39 = vpop.f32.mrb[2].mxu0 }
 0x222   : > { %v545_v40 = vpack.c.bf16 %v470_v37, %v470_v37  ;;  %v1199_v41 = vpop.f32.mrb[3].mxu0 }
 0x224   : > { %656 = vrot.lane.b32.xlu1 %v545_v40, %s1318_s20  ;;  %1211 = vmatmul.mubr.msk.bf16.vlgmr.msra.gmra.mrb[4].mxu0 %vm547_vm2, %v545_v40 }
 0x225   : > { %1221 = vmatpush3.bf16.xpose.msra.mxu0 %v664_v42  ;;  %1222 = vmatprep.mubr.msk.bf16.mxu0 %vm1317_vm1, %v1316_v8 }
 0x226   : > { %1232 = vmatprep.subr.bf16.mxu0 %v1316_v8 }
 0x228   : > { %765 = vrot.lane.b32.xlu1 %v545_v40, %s1319_s21 }
 0x22c   : > { %876 = vrot.lane.b32.xlu1 %v1446_v32, %s1320_s24 }
 0x230   : > { %874 = vrot.lane.b32.xlu1 %v545_v40, %s1320_s24 }
 0x296   : > { %v657_v44 = vpop.permute.xlu1 %656 }
 0x297   : > { %1223 = vmatmul.mubr.msk.bf16.vlgmr.msra.gmra.mrb[8].mxu0 %vm547_vm2, %v657_v44 }
 0x298   : > { %1233 = vmatpush3.bf16.xpose.msra.mxu0 %v773_v45  ;;  %1234 = vmatprep.mubr.msk.bf16.mxu0 %vm1317_vm1, %v1316_v8 }
 0x299   : > { %1244 = vmatprep.subr.bf16.mxu0 %v1316_v8 }
 0x29a   : > { %v766_v46 = vpop.permute.xlu1 %765 }
 0x29e   : > { %v877_v47 = vpop.permute.xlu1 %876 }
 0x29f   : > { %v882_v48 = vsel %vm547_vm2, %v877_v47, 0  ;;  %1235 = vmatmul.mubr.msk.bf16.vlgmr.msra.gmra.mrb[12].mxu0 %vm547_vm2, %v766_v46 }
 0x2a0   : > { %1245 = vmatpush3.bf16.xpose.msra.mxu0 %v882_v48  ;;  %1246 = vmatprep.mubr.msk.bf16.mxu0 %vm1317_vm1, %v1316_v8 }
 0x2a1   : > { %1256 = vmatprep.subr.bf16.mxu0 %v1316_v8 }
 0x2a2   : > { %v875_v49 = vpop.permute.xlu1 %874 }
 0x2a7   : > { %1247 = vmatmul.mubr.msk.bf16.vlgmr.msra.gmra.mrb[16].mxu0 %vm547_vm2, %v875_v49 }
 0x2a8   : > { %1260 = vmatprep.mubr.msk.bf16.mxu0 %vm1317_vm1, %v1316_v8 }
 0x2f7   : > { %v588_v50 = vpop.f32.mrb[4].mxu0 }
 0x2f8   : > { %v594_v51 = vmul.f32 0.35355338, %v588_v50  ;;  %v1212_v52 = vpop.f32.mrb[5].mxu0 }
 0x2f9   : > { %v591_v53 = vpop.f32.mrb[6].mxu0 }
 0x2fa   : > { %v1213_v54 = vpop.f32.mrb[7].mxu0  ;;  %v596_v55 = vsel %vm595_vm3, %v594_v51, -inf }
 0x2fb   : > { %597 = vmax.xlane.f32.xlu1 %v596_v55 }
 0x36a   : > { %v700_v56 = vpop.f32.mrb[8].mxu0 }
 0x36b   : > { %v706_v57 = vmul.f32 0.35355338, %v700_v56  ;;  %v1224_v58 = vpop.f32.mrb[9].mxu0 }
 0x36c   : > { %v703_v59 = vpop.f32.mrb[10].mxu0 }
 0x36d   : > { %v1225_v60 = vpop.f32.mrb[11].mxu0  ;;  %v707_v61 = vsel %vm595_vm3, %v706_v57, -inf }
 0x36e   : > { %708 = vmax.xlane.f32.xlu0 %v707_v61  ;;  %v1288_v60 = vld [vmem:[%s1531_s8] sm:$0xff]   ;;  %v1289_v61 = vld [vmem:[%s1531_s8 + $0x8] sm:$0xff]  }
 0x36f   : > { %1257 = vmatpush3.bf16.msra.mxu0 %v1288_v60 }
 0x370   : > { %1258 = vmatprep.subr.bf16.mxu0 %v1316_v8 }
 0x372   : > { %v809_v62 = vpop.f32.mrb[12].mxu0 }
 0x373   : > { %v815_v63 = vmul.f32 0.35355338, %v809_v62  ;;  %v1236_v1 = vpop.f32.mrb[13].mxu0  ;;  %1259 = vmatpush3.bf16.msra.mxu0 %v1289_v61 }
 0x374   : > { %v812_v2 = vpop.f32.mrb[14].mxu0 }
 0x375   : > { %v1237_v3 = vpop.f32.mrb[15].mxu0  ;;  %v816_v4 = vsel %vm595_vm3, %v815_v63, -inf }
 0x376   : > { %817 = vmax.xlane.f32.xlu1 %v816_v4 }
 0x37a   : > { %v918_v5 = vpop.f32.mrb[16].mxu0 }
 0x37b   : > { %v924_v6 = vmul.f32 0.35355338, %v918_v5  ;;  %v1248_v7 = vpop.f32.mrb[17].mxu0 }
 0x37c   : > { %v921_v9 = vpop.f32.mrb[18].mxu0 }
 0x37d   : > { %v1249_v10 = vpop.f32.mrb[19].mxu0  ;;  %v925_v11 = vsel %vm595_vm3, %v924_v6, -inf }
 0x37e   : > { %926 = vmax.xlane.f32.xlu1 %v925_v11 }
 0x388   : > { %v598_v12 = vpop.xlane.xlu1 %597 }
 0x389   : > { %v599_v13 = vsub.f32 %v594_v51, %v598_v12 }
 0x38b   : > { %v600_v14 = vmul.f32 1.442695, %v599_v13 }
 0x38d   : > { %1292 = vpow2.f32 %v600_v14  ;;  %v1160_v14 = vld [vmem:[%s1532_s9] ss:$0 sm:$0xff] }
 0x397   : > { %v1293_v15 = vpop.eup %1292 }
 0x398   : > { %v602_v16 = vsel %vm595_vm3, %v1293_v15, 0.0 }
 0x399   : > { %603 = vadd.xlane.f32.xlu0 %v602_v16 }
 0x3fb   : > { %v709_v17 = vpop.xlane.xlu0 %708 }
 0x3fc   : > { %v710_v18 = vsub.f32 %v706_v57, %v709_v17 }
 0x3fe   : > { %v711_v19 = vmul.f32 1.442695, %v710_v18 }
 0x400   : > { %1294 = vpow2.f32 %v711_v19 }
 0x403   : > { %v818_v20 = vpop.xlane.xlu1 %817 }
 0x404   : > { %v819_v21 = vsub.f32 %v815_v63, %v818_v20 }
 0x406   : > { %v820_v22 = vmul.f32 1.442695, %v819_v21 }
 0x408   : > { %1296 = vpow2.f32 %v820_v22 }
 0x40a   : > { %v1295_v23 = vpop.eup %1294 }
 0x40b   : > { %v713_v24 = vsel %vm595_vm3, %v1295_v23, 0.0  ;;  %v927_v27 = vpop.xlane.xlu1 %926 }
 0x40c   : > { %714 = vadd.xlane.f32.xlu1 %v713_v24  ;;  %v928_v28 = vsub.f32 %v924_v6, %v927_v27 }
 0x40e   : > { %v929_v29 = vmul.f32 1.442695, %v928_v28 }
 0x410   : > { %1298 = vpow2.f32 %v929_v29 }
 0x412   : > { %v1297_v25 = vpop.eup %1296 }
 0x413   : > { %v822_v26 = vsel %vm595_vm3, %v1297_v25, 0.0 }
 0x414   : > { %823 = vadd.xlane.f32.xlu0 %v822_v26 }
 0x41a   : > { %v1299_v30 = vpop.eup %1298 }
 0x41b   : > { %v931_v31 = vsel %vm595_vm3, %v1299_v30, 0.0 }
 0x41d   : > { %719 = vrot.lane.b32.xlu1 %v1446_v32, %s1321_s25 }
 0x426   : > { %v604_v33 = vpop.xlane.xlu0 %603 }
 0x427   : > { %1300 = vrcp.f32 %v604_v33 }
 0x42a   : > { %609 = vrot.lane.b32.xlu0 %v1446_v32, %s1322_s26 }
 0x42e   : > { %937 = vrot.lane.b32.xlu0 %v1446_v32, %s1323_s27 }
 0x431   : > { %v1301_v35 = vpop.eup %1300 }
 0x432   : > { %v606_v37 = vmul.f32 %v1301_v35, %v1293_v15 }
 0x434   : > { %v607_v39 = vpack.c.bf16 %v606_v37, %v606_v37 }
 0x441   : > { %932 = vadd.xlane.f32.xlu1 %v931_v31 }
 0x452   : > { %828 = vrot.lane.b32.xlu1 %v1446_v32, %s1324_s28 }
 0x499   : > { %v715_v34 = vpop.xlane.xlu1 %714 }
 0x49a   : > { %1302 = vrcp.f32 %v715_v34 }
 0x49d   : > { %v720_v41 = vpop.permute.xlu1 %719 }
 0x4a1   : > { %v824_v36 = vpop.xlane.xlu0 %823 }
 0x4a2   : > { %1304 = vrcp.f32 %v824_v36 }
 0x4a4   : > { %v1303_v40 = vpop.eup %1302 }
 0x4a5   : > { %v610_v38 = vpop.permute.xlu0 %609  ;;  %v717_v32 = vmul.f32 %v1303_v40, %v1295_v23 }
 0x4a6   : > { %1215 = vmatpush3.bf16.msra.mxu1 %v610_v38 }
 0x4a7   : > { %1226 = vmatprep.subr.bf16.mxu1 %v1316_v8  ;;  %v718_v42 = vpack.c.bf16 %v717_v32, %v717_v32 }
 0x4a9   : > { %1217 = vmatmul.mubr.msk.bf16.vlgmr.msra.gmra.mrb[4].mxu1 %vm595_vm3, %v607_v39  ;;  %v938_v48 = vpop.permute.xlu0 %937 }
 0x4aa   : > { %1227 = vmatpush3.bf16.msra.mxu1 %v720_v41  ;;  %1228 = vmatprep.mubr.msk.bf16.mxu1 %vm1317_vm1, %v1316_v8 }
 0x4ab   : > { %1238 = vmatprep.subr.bf16.mxu1 %v1316_v8 }
 0x4ac   : > { %v1305_v43 = vpop.eup %1304 }
 0x4ad   : > { %v826_v45 = vmul.f32 %v1305_v43, %v1297_v25 }
 0x4af   : > { %v827_v47 = vpack.c.bf16 %v826_v45, %v826_v45 }
 0x4b1   : > { %1229 = vmatmul.mubr.msk.bf16.vlgmr.msra.gmra.mrb[8].mxu1 %vm595_vm3, %v718_v42 }
 0x4b2   : > { %1240 = vmatprep.mubr.msk.bf16.mxu1 %vm1317_vm1, %v1316_v8 }
 0x4ce   : > { %v933_v44 = vpop.xlane.xlu1 %932 }
 0x4cf   : > { %1306 = vrcp.f32 %v933_v44 }
 0x4d2   : > { %v829_v46 = vpop.permute.xlu1 %828 }
 0x4d3   : > { %1239 = vmatpush3.bf16.msra.mxu1 %v829_v46 }
 0x4d4   : > { %1250 = vmatprep.subr.bf16.mxu1 %v1316_v8 }
 0x4d6   : > { %1241 = vmatmul.mubr.msk.bf16.vlgmr.msra.gmra.mrb[12].mxu1 %vm595_vm3, %v827_v47 }
 0x4d7   : > { %1251 = vmatpush3.bf16.msra.mxu1 %v938_v48  ;;  %1252 = vmatprep.mubr.msk.bf16.mxu1 %vm1317_vm1, %v1316_v8 }
 0x4d9   : > { %v1307_v49 = vpop.eup %1306 }
 0x4da   : > { %v935_v50 = vmul.f32 %v1307_v49, %v1299_v30 }
 0x4dc   : > { %v936_v51 = vpack.c.bf16 %v935_v50, %v935_v50 }
 0x4de   : > { %1253 = vmatmul.mubr.msk.bf16.vlgmr.msra.gmra.mrb[16].mxu1 %vm595_vm3, %v936_v51 }
 0x57c   : > { %v649_v52 = vpop.f32.mrb[4].mxu1 }
 0x57d   : > { %v1218_v53 = vpop.f32.mrb[5].mxu1 }
 0x57e   : > { %v652_v54 = vpop.f32.mrb[6].mxu1 }
 0x57f   : > { %v1219_v55 = vpop.f32.mrb[7].mxu1 }
 0x584   : > { %v759_v56 = vpop.f32.mrb[8].mxu1 }
 0x585   : > { %984 = vrot.lane.b32.xlu1 %v759_v56, %s1325_s29  ;;  %v1230_v57 = vpop.f32.mrb[9].mxu1 }
 0x586   : > { %v762_v58 = vpop.f32.mrb[10].mxu1 }
 0x587   : > { %v1231_v59 = vpop.f32.mrb[11].mxu1 }
 0x5a9   : > { %v868_v62 = vpop.f32.mrb[12].mxu1 }
 0x5aa   : > { %988 = vrot.lane.b32.xlu0 %v868_v62, %s1326_s17  ;;  %v1242_v63 = vpop.f32.mrb[13].mxu1 }
 0x5ab   : > { %v871_v1 = vpop.f32.mrb[14].mxu1 }
 0x5ac   : > { %v1243_v2 = vpop.f32.mrb[15].mxu1 }
 0x5b1   : > { %v977_v3 = vpop.f32.mrb[16].mxu1 }
 0x5b2   : > { %992 = vrot.lane.b32.xlu1 %v977_v3, %s1327_s18  ;;  %v1254_v4 = vpop.f32.mrb[17].mxu1 }
 0x5b3   : > { %v980_v5 = vpop.f32.mrb[18].mxu1 }
 0x5b4   : > { %v1255_v6 = vpop.f32.mrb[19].mxu1 }
 0x5f7   : > { %v985_v7 = vpop.permute.xlu1 %984 }
 0x5f8   : > { %v995_v9 = vsel %vm547_vm2, %v649_v52, %v985_v7 }
 0x61c   : > { %v989_v8 = vpop.permute.xlu0 %988 }
 0x61d   : > { %v996_v10 = vsel %vm595_vm3, %v995_v9, %v989_v8 }
 0x624   : > { %v993_v11 = vpop.permute.xlu1 %992 }
 0x625   : > { %v998_v12 = vsel %vm997_vm4, %v996_v10, %v993_v11 }
 0x626   : > { %v999_v13 = vpack.c.bf16 %v998_v12, %v998_v12 }
 0x628   : > { %1261 = vmatmul.mubr.msk.bf16.vlgmr.msra.gmra.mrb[20].mxu0 %vm379_vm0, %v999_v13 }
 0x6fb   : > { %v1060_v15 = vpop.f32.mrb[20].mxu0 }
 0x6fc   : > { %v1061_v16 = vadd.f32 %v1160_v14, %v1060_v15  ;;  %v1262_v17 = vpop.f32.mrb[21].mxu0 }
 0x6fd   : > { %v1063_v18 = vpop.f32.mrb[22].mxu0 }
 0x6fe   : > { %v1066_v19 = vadd.f32 %v1061_v16, %v1399_v0  ;;  %v1263_v20 = vpop.f32.mrb[23].mxu0 }
 0x700   : > { %1067 = vst.msk [vmem:[%s374_s23] sm:$0xff] %vm379_vm0, %v1066_v19 }
 0x701 PF: > { %s20_s13 = sadd.s32 1, %s1314_s13  }
 0x702   : > { %p17_p4 = scmp.ge.s32.totalorder %s20_s13, 4  }
 0x704   :  { %19 = sbr.rel (!%p17_p4) target bundleno = 1 (0x1), region = 93 }

// kernel: causal_decoder_forward.7
= control target key start
LH: loop header
LB: loop body
LE: loop exit
PB: predicated region body
PF: predicated region fallthrough
CT: control target
= control target key end

     0   :  { %s1194_s24 = smov 0   ;;  %s1323_s0 = inlined_call_operand.vmem [shape: f32[2,8,32], index: 0, kind: input, shape index: {}]   ;;  %s1324_s1 = inlined_call_operand.vmem [shape: f32[1,32], index: 1, kind: input, shape index: {}]   ;;  %s1325_s2 = inlined_call_operand.vmem [shape: f32[1,32], index: 2, kind: input, shape index: {}]   ;;  %s1326_s3 = inlined_call_operand.vmem [shape: bf16[32,96], index: 3, kind: input, shape index: {}]   ;;  %s1327_s4 = inlined_call_operand.vmem [shape: f32[1,96], index: 4, kind: input, shape index: {}]   ;;  %s1328_s5 = inlined_call_operand.vmem [shape: bf16[32,32], index: 5, kind: input, shape index: {}]   ;;  %s1329_s6 = inlined_call_operand.vmem [shape: f32[1,32], index: 6, kind: input, shape index: {}]   ;;  %s1330_s7 = inlined_call_operand.vmem [shape: f32[2,8,32], index: 7, kind: output, shape index: {}]  }
   0x1 LB: > { %s969_s25 = sadd.s32 4294967295, %s1135_s24   ;;  %p973_p0 = scmp.ge.s32.totalorder %s1135_s24, 1  ;;  %s1135_s24 = sphi %s1194_s24, %s17_s24  }
   0x2   : > { %p236_p1 = scmp.lt.s32.totalorder %s1135_s24, 3 }
   0x4   : > { %p237_p2 = pnand %p973_p0, %p236_p1 }
   0x5   : > { %p266_p3 = scmp.lt.s32.totalorder (!%p237_p2), %s969_s25, 1  ;;  %vm278_vm0 = vcmask (!%p237_p2), 261120   ;;  %v1107_v7 = vld [vmem:[%s1326_s3] sm:$0xff] (!%p237_p2)   ;;  %v1137_v8 = vmov (!%p237_p2), 0.0   ;;  %vm1138_vm1 = vmmov (!%p237_p2), 0   ;;  %v1108_v9 = vld [vmem:[%s1326_s3 + $0x8] sm:$0xff] (!%p237_p2)   ;;  %v374_v38 = vlaneseq (!%p237_p2) }
   0x6   : > { %240 = sbr.rel (%p237_p2) target bundleno = 1811 (0x713), region = 48  ;;  %1018 = vmatprep.subr.bf16.mxu0 (!%p237_p2), %v1137_v8  ;;  %1022 = vmatprep.mubr.msk.bf16.mxu0 (!%p237_p2), %vm1138_vm1, %v1137_v8  ;;  %v976_v14 = vld [vmem:[%s1324_s1] ss:$0 sm:$0xff] (!%p237_p2)  ;;  %s1139_s17 = smov (!%p237_p2), 120   ;;  %vm384_vm2 = vcmask (!%p237_p2), 64512   ;;  %vm450_vm4 = vcmask (!%p237_p2), 1043456  }
   0x7   : > { %1019 = vmatpush3.bf16.msra.mxu0 (!%p237_p2), %v1107_v7  ;;  %1026 = vmatprep.subr.bf16.mxu1 (!%p237_p2), %v1137_v8  ;;  %v977_v16 = vld [vmem:[%s1325_s2] ss:$0 sm:$0xff] (!%p237_p2)  ;;  %s1140_s18 = smov (!%p237_p2), 96   ;;  %s1141_s19 = smov (!%p237_p2), 88   ;;  %v375_v39 = vshrl.u32 (!%p237_p2), %v374_v38, 7  ;;  %v377_v40 = vand.u32 (!%p237_p2), 127, %v374_v38 }
   0x8   : > { %1020 = vmatprep.subr.bf16.mxu0 (!%p237_p2), %v1137_v8  ;;  %1028 = vmatprep.mubr.msk.bf16.mxu1 (!%p237_p2), %vm1138_vm1, %v1137_v8  ;;  %v978_v20 = vld [vmem:[%s1327_s4] ss:$0 sm:$0xff] (!%p237_p2)  ;;  %s1142_s20 = smov (!%p237_p2), 80   ;;  %s1143_s21 = smov (!%p237_p2), 112   ;;  %v1146_v42 = vmov (!%p237_p2), -1e+09  }
   0x9   : > { %s1144_s22 = smov (!%p237_p2), 72   ;;  %s1145_s23 = smov (!%p237_p2), 104   ;;  %vm378_vm3 = vcmp.le.s32.totalorder (!%p237_p2), %v377_v40, %v375_v39  ;;  %vm843_vm5 = vcmask (!%p237_p2), 130048   ;;  %vm845_vm6 = vcmask (!%p237_p2), 195584  }
   0xa   : > { %v379_v43 = vsel (!%p237_p2), %vm378_vm3, 0.0, %v1146_v42  ;;  %s1147_s27 = smov (!%p237_p2), 64   ;;  %s1148_s28 = smov (!%p237_p2), 56  }
   0xb   : > { %1021 = vmatpush3.bf16.msra.mxu0 (!%p237_p2), %v1108_v9  ;;  %s1150_s30 = smov (!%p237_p2), 40   ;;  %s1151_s8 = smov (!%p237_p2), 8  }
   0xc   : > { %1032 = vmatprep.subr.bf16.mxu0 (!%p237_p2), %v1137_v8  ;;  %s1152_s13 = smov (!%p237_p2), 16   ;;  %s1153_s14 = smov (!%p237_p2), 24  }
   0xd   : > { %s1332_s25 = smov (!%p266_p3, %s969_s25), 1 }
   0xe   : > { %s974_s26 = sshll.u32 %s1332_s25, 3 }
   0xf   : > { %s269_s29 = scalar_lea.vmem %s1323_s0, %s974_s26 }
  0x10   : > { %v1210_v0 = vld [vmem:[%s269_s29] sm:$0xff]  ;;  %s1149_s29 = smov 48  }
  0x11   : > { %v279_v1 = vsel %vm278_vm0, %v1210_v0, 0.0 }
  0x12   : > { %280 = vadd.xlane.f32.xlu0 %v279_v1 }
  0x9f   : > { %v281_v2 = vpop.xlane.xlu0 %280 }
  0xa0   : > { %v283_v3 = vmul.f32 0.03125, %v281_v2 }
  0xa2   : > { %v284_v4 = vsub.f32 %v1210_v0, %v283_v3 }
  0xa4   : > { %v285_v5 = vmul.f32 %v284_v4, %v284_v4 }
  0xa6   : > { %v286_v6 = vsel %vm278_vm0, %v285_v5, 0.0 }
  0xa7   : > { %287 = vadd.xlane.f32.xlu0 %v286_v6 }
 0x134   : > { %v288_v10 = vpop.xlane.xlu0 %287 }
 0x135   : > { %v289_v11 = vmul.f32 0.03125, %v288_v10 }
 0x137   : > { %v290_v12 = vadd.f32 1e-05, %v289_v11 }
 0x139   : > { %1111 = vrsqrt.f32 %v290_v12 }
 0x143   : > { %v1112_v13 = vpop.eup %1111 }
 0x144   : > { %v292_v15 = vmul.f32 %v1112_v13, %v284_v4 }
 0x146   : > { %v299_v17 = vmul.f32 %v976_v14, %v292_v15 }
 0x148   : > { %v306_v18 = vadd.f32 %v977_v16, %v299_v17 }
 0x14a   : > { %v307_v19 = vpack.c.bf16 %v306_v18, %v306_v18 }
 0x14c   : > { %1023 = vmatmul.mubr.msk.bf16.vlgmr.msra.gmra.mrb[0].mxu0 %vm278_vm0, %v307_v19 }
 0x14d   : > { %1034 = vmatprep.mubr.msk.bf16.mxu0 %vm1138_vm1, %v1137_v8 }
 0x21f   : > { %v368_v21 = vpop.f32.mrb[0].mxu0 }
 0x220   : > { %v369_v22 = vadd.f32 %v978_v20, %v368_v21  ;;  %v1024_v23 = vpop.f32.mrb[1].mxu0 }
 0x221   : > { %v371_v24 = vpop.f32.mrb[2].mxu0 }
 0x222   : > { %v1242_v25 = vpack.c.bf16 %v369_v22, %v369_v22  ;;  %v1025_v26 = vpop.f32.mrb[3].mxu0 }
 0x224   : > { %494 = vrot.lane.b32.xlu0 %v1242_v25, %s1139_s17  ;;  %382 = vrot.lane.b32.xlu1 %v1242_v25, %s1140_s18 }
 0x228   : > { %496 = vrot.lane.b32.xlu1 %v1242_v25, %s1141_s19  ;;  %s273_s19 = scalar_lea.vmem %s1330_s7, %s974_s26 }
 0x22c   : > { %608 = vrot.lane.b32.xlu1 %v1242_v25, %s1142_s20 }
 0x230   : > { %606 = vrot.lane.b32.xlu1 %v1242_v25, %s1143_s21 }
 0x234   : > { %720 = vrot.lane.b32.xlu1 %v1242_v25, %s1144_s22 }
 0x238   : > { %718 = vrot.lane.b32.xlu1 %v1242_v25, %s1145_s23 }
 0x296   : > { %v383_v27 = vpop.permute.xlu1 %382  ;;  %v495_v32 = vpop.permute.xlu0 %494 }
 0x297   : > { %v389_v28 = vsel %vm384_vm2, %v383_v27, 0 }
 0x298   : > { %1027 = vmatpush3.bf16.xpose.msra.mxu1 %v389_v28 }
 0x299   : > { %1038 = vmatprep.subr.bf16.mxu1 %v1137_v8 }
 0x29a   : > { %v497_v29 = vpop.permute.xlu1 %496 }
 0x29b   : > { %v502_v30 = vsel %vm384_vm2, %v497_v29, 0 }
 0x29e   : > { %v609_v31 = vpop.permute.xlu1 %608 }
 0x29f   : > { %1029 = vmatmul.mubr.msk.bf16.vlgmr.msra.gmra.mrb[0].mxu1 %vm384_vm2, %v1242_v25  ;;  %v614_v34 = vsel %vm384_vm2, %v609_v31, 0 }
 0x2a0   : > { %1039 = vmatpush3.bf16.xpose.msra.mxu1 %v502_v30  ;;  %1040 = vmatprep.mubr.msk.bf16.mxu1 %vm1138_vm1, %v1137_v8 }
 0x2a1   : > { %1050 = vmatprep.subr.bf16.mxu1 %v1137_v8 }
 0x2a2   : > { %v607_v33 = vpop.permute.xlu1 %606 }
 0x2a6   : > { %v721_v35 = vpop.permute.xlu1 %720 }
 0x2a7   : > { %1041 = vmatmul.mubr.msk.bf16.vlgmr.msra.gmra.mrb[4].mxu1 %vm384_vm2, %v495_v32  ;;  %v726_v36 = vsel %vm384_vm2, %v721_v35, 0 }
 0x2a8   : > { %1051 = vmatpush3.bf16.xpose.msra.mxu1 %v614_v34  ;;  %1052 = vmatprep.mubr.msk.bf16.mxu1 %vm1138_vm1, %v1137_v8 }
 0x2a9   : > { %1062 = vmatprep.subr.bf16.mxu1 %v1137_v8 }
 0x2aa   : > { %v719_v37 = vpop.permute.xlu1 %718 }
 0x2af   : > { %1053 = vmatmul.mubr.msk.bf16.vlgmr.msra.gmra.mrb[8].mxu1 %vm384_vm2, %v607_v33 }
 0x2b0   : > { %1063 = vmatpush3.bf16.xpose.msra.mxu1 %v726_v36  ;;  %1064 = vmatprep.mubr.msk.bf16.mxu1 %vm1138_vm1, %v1137_v8 }
 0x2b1   : > { %1074 = vmatprep.subr.bf16.mxu1 %v1137_v8 }
 0x2b7   : > { %1065 = vmatmul.mubr.msk.bf16.vlgmr.msra.gmra.mrb[12].mxu1 %vm384_vm2, %v719_v37 }
 0x2b8   : > { %1078 = vmatprep.mubr.msk.bf16.mxu1 %vm1138_vm1, %v1137_v8 }
 0x372   : > { %v425_v41 = vpop.f32.mrb[0].mxu1 }
 0x373   : > { %v431_v44 = vmul.f32 0.35355338, %v425_v41  ;;  %v1030_v45 = vpop.f32.mrb[1].mxu1 }
 0x374   : > { %v428_v46 = vpop.f32.mrb[2].mxu1 }
 0x375   : > { %v1031_v47 = vpop.f32.mrb[3].mxu1  ;;  %v432_v48 = vadd.f32 %v431_v44, %v379_v43 }
 0x377   : > { %v433_v49 = vsel %vm384_vm2, %v432_v48, -inf }
 0x378   : > { %434 = vmax.xlane.f32.xlu1 %v433_v49 }
 0x37a   : > { %v538_v50 = vpop.f32.mrb[4].mxu1 }
 0x37b   : > { %v544_v51 = vmul.f32 0.35355338, %v538_v50  ;;  %v1042_v52 = vpop.f32.mrb[5].mxu1 }
 0x37c   : > { %v541_v53 = vpop.f32.mrb[6].mxu1 }
 0x37d   : > { %v1043_v54 = vpop.f32.mrb[7].mxu1  ;;  %v545_v55 = vadd.f32 %v544_v51, %v379_v43 }
 0x37f   : > { %v546_v56 = vsel %vm384_vm2, %v545_v55, -inf }
 0x380   : > { %547 = vmax.xlane.f32.xlu0 %v546_v56 }
 0x382   : > { %v650_v57 = vpop.f32.mrb[8].mxu1 }
 0x383   : > { %v656_v58 = vmul.f32 0.35355338, %v650_v57  ;;  %v1054_v59 = vpop.f32.mrb[9].mxu1 }
 0x384   : > { %v653_v60 = vpop.f32.mrb[10].mxu1 }
 0x385   : > { %v1055_v61 = vpop.f32.mrb[11].mxu1  ;;  %v657_v62 = vadd.f32 %v656_v58, %v379_v43 }
 0x386   : > { %v1109_v61 = vld [vmem:[%s1328_s5] sm:$0xff]  }
 0x387   : > { %v658_v63 = vsel %vm384_vm2, %v657_v62, -inf  ;;  %1075 = vmatpush3.bf16.msra.mxu1 %v1109_v61 }
 0x388   : > { %659 = vmax.xlane.f32.xlu1 %v658_v63  ;;  %1076 = vmatprep.subr.bf16.mxu1 %v1137_v8 }
 0x38a   : > { %v762_v1 = vpop.f32.mrb[12].mxu1 }
 0x38b   : > { %v768_v2 = vmul.f32 0.35355338, %v762_v1  ;;  %v1066_v3 = vpop.f32.mrb[13].mxu1 }
 0x38c   : > { %v765_v4 = vpop.f32.mrb[14].mxu1 }
 0x38d   : > { %v1067_v5 = vpop.f32.mrb[15].mxu1  ;;  %v769_v6 = vadd.f32 %v768_v2, %v379_v43 }
 0x38f   : > { %v770_v7 = vsel %vm384_vm2, %v769_v6, -inf }
 0x390   : > { %771 = vmax.xlane.f32.xlu0 %v770_v7 }
 0x405   : > { %v435_v9 = vpop.xlane.xlu1 %434 }
 0x406   : > { %v436_v10 = vsub.f32 %v432_v48, %v435_v9 }
 0x408   : > { %v437_v11 = vmul.f32 1.442695, %v436_v10 }
 0x40a   : > { %1113 = vpow2.f32 %v437_v11 }
 0x40d   : > { %v548_v12 = vpop.xlane.xlu0 %547 }
 0x40e   : > { %v549_v13 = vsub.f32 %v545_v55, %v548_v12 }
 0x410   : > { %v550_v14 = vmul.f32 1.442695, %v549_v13 }
 0x412   : > { %1115 = vpow2.f32 %v550_v14 }
 0x414   : > { %v1114_v15 = vpop.eup %1113 }
 0x415   : > { %v439_v16 = vsel %vm384_vm2, %v1114_v15, 0.0  ;;  %v660_v24 = vpop.xlane.xlu1 %659 }
 0x416   : > { %440 = vadd.xlane.f32.xlu1 %v439_v16  ;;  %v661_v26 = vsub.f32 %v657_v62, %v660_v24  ;;  %v1110_v62 = vld [vmem:[%s1328_s5 + $0x8] sm:$0xff]  }
 0x417   : > { %1077 = vmatpush3.bf16.msra.mxu1 %v1110_v62 }
 0x418   : > { %v662_v27 = vmul.f32 1.442695, %v661_v26 }
 0x41c   : > { %v1116_v17 = vpop.eup %1115 }
 0x41d   : > { %v772_v18 = vpop.xlane.xlu0 %771  ;;  %v552_v19 = vsel %vm384_vm2, %v1116_v17, 0.0 }
 0x41e   : > { %v773_v20 = vsub.f32 %v769_v6, %v772_v18  ;;  %553 = vadd.xlane.f32.xlu0 %v552_v19 }
 0x420   : > { %v774_v21 = vmul.f32 1.442695, %v773_v20 }
 0x422   : > { %1117 = vpow2.f32 %v774_v21 }
 0x423   : > { %1119 = vpow2.f32 %v662_v27 }
 0x427   : > { %445 = vrot.lane.b32.xlu1 %v1242_v25, %s1147_s27 }
 0x42c   : > { %v1118_v22 = vpop.eup %1117 }
 0x42d   : > { %v776_v23 = vsel %vm384_vm2, %v1118_v22, 0.0  ;;  %v1120_v28 = vpop.eup %1119 }
 0x42e   : > { %777 = vadd.xlane.f32.xlu0 %v776_v23  ;;  %v664_v29 = vsel %vm384_vm2, %v1120_v28, 0.0 }
 0x444   : > { %558 = vrot.lane.b32.xlu0 %v1242_v25, %s1148_s28 }
 0x44b   : > { %665 = vadd.xlane.f32.xlu1 %v664_v29 }
 0x45c   : > { %670 = vrot.lane.b32.xlu1 %v1242_v25, %s1149_s29 }
 0x460   : > { %782 = vrot.lane.b32.xlu1 %v1242_v25, %s1150_s30 }
 0x4a3   : > { %v441_v30 = vpop.xlane.xlu1 %440 }
 0x4a4   : > { %1121 = vrcp.f32 %v441_v30 }
 0x4a7   : > { %v446_v31 = vpop.permute.xlu1 %445 }
 0x4a8   : > { %v452_v32 = vsel %vm450_vm4, %v446_v31, 0 }
 0x4a9   : > { %1033 = vmatpush3.bf16.msra.mxu0 %v452_v32 }
 0x4aa   : > { %1044 = vmatprep.subr.bf16.mxu0 %v1137_v8 }
 0x4ab   : > { %v554_v34 = vpop.xlane.xlu0 %553 }
 0x4ac   : > { %1123 = vrcp.f32 %v554_v34 }
 0x4ae   : > { %v1122_v33 = vpop.eup %1121 }
 0x4af   : > { %v443_v35 = vmul.f32 %v1122_v33, %v1114_v15  ;;  %v990_v15 = vld [vmem:[%s1329_s6] ss:$0 sm:$0xff] }
 0x4b1   : > { %v444_v36 = vpack.c.bf16 %v443_v35, %v443_v35 }
 0x4b3   : > { %1035 = vmatmul.mubr.msk.bf16.vlgmr.msra.gmra.mrb[4].mxu0 %vm384_vm2, %v444_v36 }
 0x4b4   : > { %1046 = vmatprep.mubr.msk.bf16.mxu0 %vm1138_vm1, %v1137_v8 }
 0x4b6   : > { %v1124_v25 = vpop.eup %1123 }
 0x4b7   : > { %v556_v38 = vmul.f32 %v1124_v25, %v1116_v17 }
 0x4b9   : > { %v557_v41 = vpack.c.bf16 %v556_v38, %v556_v38 }
 0x4bb   : > { %v778_v37 = vpop.xlane.xlu0 %777 }
 0x4bf   : > { %v559_v39 = vpop.permute.xlu0 %558 }
 0x4c0   : > { %v564_v40 = vsel %vm450_vm4, %v559_v39, 0 }
 0x4c1   : > { %1045 = vmatpush3.bf16.msra.mxu0 %v564_v40 }
 0x4c2   : > { %1056 = vmatprep.subr.bf16.mxu0 %v1137_v8 }
 0x4c4   : > { %1047 = vmatmul.mubr.msk.bf16.vlgmr.msra.gmra.mrb[8].mxu0 %vm384_vm2, %v557_v41 }
 0x4c5   : > { %1058 = vmatprep.mubr.msk.bf16.mxu0 %vm1138_vm1, %v1137_v8 }
 0x4d8   : > { %v666_v42 = vpop.xlane.xlu1 %665 }
 0x4d9   : > { %1125 = vrcp.f32 %v666_v42 }
 0x4da   : > { %1127 = vrcp.f32 %v778_v37 }
 0x4dc   : > { %v671_v43 = vpop.permute.xlu1 %670 }
 0x4dd   : > { %v676_v44 = vsel %vm450_vm4, %v671_v43, 0 }
 0x4de   : > { %1057 = vmatpush3.bf16.msra.mxu0 %v676_v44 }
 0x4df   : > { %1068 = vmatprep.subr.bf16.mxu0 %v1137_v8 }
 0x4e0   : > { %v783_v47 = vpop.permute.xlu1 %782 }
 0x4e1   : > { %v788_v50 = vsel %vm450_vm4, %v783_v47, 0 }
 0x4e3   : > { %v1126_v45 = vpop.eup %1125 }
 0x4e4   : > { %v668_v46 = vmul.f32 %v1126_v45, %v1120_v28  ;;  %v1128_v49 = vpop.eup %1127 }
 0x4e5   : > { %v780_v51 = vmul.f32 %v1128_v49, %v1118_v22 }
 0x4e6   : > { %v669_v48 = vpack.c.bf16 %v668_v46, %v668_v46 }
 0x4e7   : > { %v781_v52 = vpack.c.bf16 %v780_v51, %v780_v51 }
 0x4e8   : > { %1059 = vmatmul.mubr.msk.bf16.vlgmr.msra.gmra.mrb[12].mxu0 %vm384_vm2, %v669_v48 }
 0x4e9   : > { %1069 = vmatpush3.bf16.msra.mxu0 %v788_v50  ;;  %1070 = vmatprep.mubr.msk.bf16.mxu0 %vm1138_vm1, %v1137_v8 }
 0x4f0   : > { %1071 = vmatmul.mubr.msk.bf16.vlgmr.msra.gmra.mrb[16].mxu0 %vm384_vm2, %v781_v52 }
 0x586   : > { %v488_v53 = vpop.f32.mrb[4].mxu0 }
 0x587   : > { %v1036_v54 = vpop.f32.mrb[5].mxu0 }
 0x588   : > { %v491_v55 = vpop.f32.mrb[6].mxu0 }
 0x589   : > { %v1037_v56 = vpop.f32.mrb[7].mxu0 }
 0x597   : > { %v600_v57 = vpop.f32.mrb[8].mxu0 }
 0x598   : > { %831 = vrot.lane.b32.xlu0 %v600_v57, %s1151_s8  ;;  %v1048_v58 = vpop.f32.mrb[9].mxu0 }
 0x599   : > { %v603_v59 = vpop.f32.mrb[10].mxu0 }
 0x59a   : > { %v1049_v60 = vpop.f32.mrb[11].mxu0 }
 0x5bb   : > { %v712_v63 = vpop.f32.mrb[12].mxu0 }
 0x5bc   : > { %835 = vrot.lane.b32.xlu1 %v712_v63, %s1152_s13  ;;  %v1060_v1 = vpop.f32.mrb[13].mxu0 }
 0x5bd   : > { %v715_v2 = vpop.f32.mrb[14].mxu0 }
 0x5be   : > { %v1061_v3 = vpop.f32.mrb[15].mxu0 }
 0x5c3   : > { %v824_v4 = vpop.f32.mrb[16].mxu0 }
 0x5c4   : > { %839 = vrot.lane.b32.xlu0 %v824_v4, %s1153_s14  ;;  %v1072_v5 = vpop.f32.mrb[17].mxu0 }
 0x5c5   : > { %v827_v6 = vpop.f32.mrb[18].mxu0 }
 0x5c6   : > { %v1073_v7 = vpop.f32.mrb[19].mxu0 }
 0x60a   : > { %v832_v9 = vpop.permute.xlu0 %831 }
 0x60b   : > { %v842_v8 = vsel %vm384_vm2, %v488_v53, %v832_v9 }
 0x62e   : > { %v836_v10 = vpop.permute.xlu1 %835 }
 0x62f   : > { %v844_v11 = vsel %vm843_vm5, %v842_v8, %v836_v10 }
 0x636   : > { %v840_v12 = vpop.permute.xlu0 %839 }
 0x637   : > { %v846_v13 = vsel %vm845_vm6, %v844_v11, %v840_v12 }
 0x638   : > { %v847_v14 = vpack.c.bf16 %v846_v13, %v846_v13 }
 0x63a   : > { %1079 = vmatmul.mubr.msk.bf16.vlgmr.msra.gmra.mrb[16].mxu1 %vm278_vm0, %v847_v14 }
 0x70d   : > { %v908_v16 = vpop.f32.mrb[16].mxu1 }
 0x70e   : > { %v909_v17 = vadd.f32 %v990_v15, %v908_v16  ;;  %v1080_v18 = vpop.f32.mrb[17].mxu1 }
 0x70f   : > { %v911_v19 = vpop.f32.mrb[18].mxu1 }
 0x710   : > { %v914_v20 = vadd.f32 %v909_v17, %v1210_v0  ;;  %v1081_v21 = vpop.f32.mrb[19].mxu1 }
 0x712   : > { %915 = vst.msk [vmem:[%s273_s19] sm:$0xff] %vm278_vm0, %v914_v20 }
 0x713 PF: > { %s17_s24 = sadd.s32 1, %s1135_s24  }
 0x714   : > { %p14_p4 = scmp.ge.s32.totalorder %s17_s24, 4  }
 0x716   :  { %16 = sbr.rel (!%p14_p4) target bundleno = 1 (0x1), region = 78 }

// kernel: causal_decoder_forward.13
= control target key start
LH: loop header
LB: loop body
LE: loop exit
PB: predicated region body
PF: predicated region fallthrough
CT: control target
= control target key end

     0   :  { %vm19_vm0 = vcmask 261120   ;;  %s167_s0 = inlined_call_operand.vmem [shape: f32[16,32], index: 0, kind: input, shape index: {}]   ;;  %s168_s1 = inlined_call_operand.vmem [shape: f32[1,32], index: 1, kind: input, shape index: {}]   ;;  %s169_s2 = inlined_call_operand.vmem [shape: f32[1,32], index: 2, kind: input, shape index: {}]   ;;  %s170_s3 = inlined_call_operand.hbm [shape: f32[16,32], index: 3, kind: output, shape index: {}]  }
   0x1   :  { %v15_v0 = vld [vmem:[%s167_s0] sm:$0xff]  ;;  %v16_v1 = vld [vmem:[%s167_s0 + $0x8] sm:$0xff] }
   0x2   :  { %8 = vsyncpa [#allocation3], 0  ;;  %v20_v2 = vsel %vm19_vm0, %v15_v0, 0.0  ;;  %v23_v3 = vsel %vm19_vm0, %v16_v1, 0.0  ;;  %v81_v21 = vld [vmem:[%s168_s1] ss:$0 sm:$0xff] }
   0x3   :  { %21 = vadd.xlane.f32.xlu0 %v20_v2  ;;  %v82_v23 = vld [vmem:[%s169_s2] ss:$0 sm:$0xff]  ;;  %s114_s19 = smov [#allocation2]  }
   0x4   :  { %s70_s20 = sshll.u32 %s114_s19, 4  ;;  %s71_s20 = int_to_ptr.vmem [resolvable:$true] %s70_s20 }
   0x5   :  { %s90_s21 = scalar_lea.vmem %s71_s20, 256  ;;  %p95_p1 = scmp.lt.s32.totalorder %s71_s20, %s71_s20 }
   0x6   :  { %p91_p0 = scmp.ne.s32.totalorder %s71_s20, %s90_s21  ;;  %p96_p2 = scmp.lt.s32.totalorder %s90_s21, %s90_s21 }
   0x7   :  { %24 = vadd.xlane.f32.xlu0 %v23_v3 }
   0x8   :  { %p97_p3 = por %p96_p2, %p95_p1 }
   0xa   :  { %p98_p4 = pnand %p97_p3, %p91_p0 }
  0x90   :  { %v22_v4 = vpop.xlane.xlu0 %21 }
  0x91   :  { %v27_v5 = vmul.f32 0.03125, %v22_v4 }
  0x93   :  { %v29_v6 = vsub.f32 %v15_v0, %v27_v5 }
  0x94   :  { %v25_v7 = vpop.xlane.xlu0 %24 }
  0x95   :  { %v28_v8 = vmul.f32 0.03125, %v25_v7  ;;  %v31_v9 = vmul.f32 %v29_v6, %v29_v6 }
  0x97   :  { %v30_v10 = vsub.f32 %v16_v1, %v28_v8  ;;  %v33_v11 = vsel %vm19_vm0, %v31_v9, 0.0 }
  0x98   :  { %34 = vadd.xlane.f32.xlu1 %v33_v11 }
  0x99   :  { %v32_v12 = vmul.f32 %v30_v10, %v30_v10 }
  0x9b   :  { %v36_v13 = vsel %vm19_vm0, %v32_v12, 0.0 }
  0x9c   :  { %37 = vadd.xlane.f32.xlu1 %v36_v13 }
 0x125   :  { %v35_v14 = vpop.xlane.xlu1 %34 }
 0x126   :  { %v39_v15 = vmul.f32 0.03125, %v35_v14 }
 0x128   :  { %v41_v16 = vadd.f32 1e-05, %v39_v15 }
 0x129   :  { %v38_v17 = vpop.xlane.xlu1 %37 }
 0x12a   :  { %86 = vrsqrt.f32 %v41_v16  ;;  %v40_v18 = vmul.f32 0.03125, %v38_v17 }
 0x12c   :  { %v42_v19 = vadd.f32 1e-05, %v40_v18 }
 0x12e   :  { %88 = vrsqrt.f32 %v42_v19 }
 0x134   :  { %v87_v20 = vpop.eup %86 }
 0x135   :  { %v45_v22 = vmul.f32 %v87_v20, %v29_v6 }
 0x137   :  { %v53_v24 = vmul.f32 %v81_v21, %v45_v22 }
 0x138   :  { %v89_v25 = vpop.eup %88 }
 0x139   :  { %v46_v26 = vmul.f32 %v89_v25, %v30_v10  ;;  %v61_v27 = vadd.f32 %v82_v23, %v53_v24 }
 0x13b   :  { %v54_v28 = vmul.f32 %v81_v21, %v46_v26  ;;  %63 = vst.msk [vmem:[#allocation2] sm:$0xff] %vm19_vm0, %v61_v27 }
 0x13d   :  { %v62_v29 = vadd.f32 %v82_v23, %v54_v28 }
 0x13f   :  { %64 = vst.msk [vmem:[#allocation2 + $0x8] sm:$0xff] %vm19_vm0, %v62_v29 }
 0x140   :  { %101 = shalt.err (!%p98_p4)
}
 0x141   :  { %s102_s22 = scalar_lea.hbm %s170_s3, 256 }
 0x142   :  { %p103_p5 = scmp.ne.s32.totalorder %s170_s3, %s102_s22  ;;  %p106_p6 = scmp.lt.u32.totalorder %s102_s22, %s170_s3 }
 0x144   :  { %p108_p7 = pnand %p106_p6, %p103_p5 }
 0x146   :  { %111 = shalt.err (!%p108_p7)
}
 0x147   :  { %s115_s27 = smov 128   ;;  %s116_s28 = smov 8  }
 0x148   :  { %76 = dma.vmem_to_hbm [thread:$0]  %s71_s20, 256, %s170_s3, [#allocation3], %s115_s27, %s115_s27, %s116_s28  }
 0x149   :  { %112 = dma.done.wait [#allocation3], 256  }
 0x14a   :  { %113 = vsyncadd [#allocation3], 4294967040 }
 0x14b   :  { %80 = vsyncpa [#allocation3], 1 }

</bundles_post_ra>
